<compile_context>
chip_gen: v7x
topology: tpu7x:2x2x1
jax: 0.10.0
libtpu: 0.0.40
codegen_flags: <defaults>
</compile_context>

<pallas_src>
import math

import jax
import jax.numpy as jnp
from jax import lax
from jax.experimental import pallas as pl
from jax.experimental.pallas import tpu as pltpu


def _round_up(x, m):
    return ((x + m - 1) // m) * m


def _full_spec(shape):
    zeros = (0,) * len(shape)
    return pl.BlockSpec(shape, lambda: zeros)


# --------------------------- fused zGRU kernel -------------------------------
def _make_zgru_kernel(n_layers, n_lls, T, Bp, Hp):
    """Fused kernel: stacked GRU (layer-by-layer, time loop unrolled) + MLP head."""
    G = 3 * Hp
    TB = T * Bp

    def kernel(*refs):
        # ---- unpack flat ref list -------------------------------------------
        gx0_ref = refs[0]                      # (T*Bp, G) pre-projected layer-0 gates
        idx = 1
        layers = []                            # per layer: (wi, bi, wh, bh) refs
        for l in range(n_layers):
            if l == 0:
                layers.append((None, None, refs[idx], refs[idx + 1]))
                idx += 2
            else:
                layers.append((refs[idx], refs[idx + 1], refs[idx + 2], refs[idx + 3]))
                idx += 4
        mlp = []
        for _ in range(n_lls):
            mlp.append((refs[idx], refs[idx + 1]))
            idx += 2
        out_ref = refs[idx]

        # ---- layer-by-layer recurrence ---------------------------------------
        gx = gx0_ref[...]                      # (T*Bp, G) f32, layer-0 input gates
        h_all = None                           # (T*Bp, Hp) outputs of previous layer
        h = None
        for l in range(n_layers):
            wi_ref, bi_ref, wh_ref, bh_ref = layers[l]
            if l > 0:
                # Batched input projection for ALL T timesteps at once: one
                # M=T*Bp matmul off the serial chain (far better MXU
                # utilization than a per-step M=Bp dot).
                wi = wi_ref[...]
                gx = (jnp.dot(h_all.astype(wi.dtype), wi,
                              preferred_element_type=jnp.float32)
                      + jnp.broadcast_to(bi_ref[...], (TB, G)))

            # Load recurrent weight / bias ONCE per layer (hoisted out of the
            # unrolled time loop).
            wh = wh_ref[...]
            bh = jnp.broadcast_to(bh_ref[...], (Bp, G))
            last_layer = (l == n_layers - 1)

            h = jnp.zeros((Bp, Hp), jnp.float32)
            hs = []
            for t in range(T):                 # T small & static: unrolled
                gx_t = gx[t * Bp:(t + 1) * Bp, :]                 # (Bp, G) aligned slab
                gh = jnp.dot(h.astype(wh.dtype), wh,
                             preferred_element_type=jnp.float32) + bh
                # Fused r/z sigmoid over the contiguous first-2*Hp slab.
                rz = jax.nn.sigmoid(gx_t[:, :2 * Hp] + gh[:, :2 * Hp])
                r = rz[:, :Hp]
                z = rz[:, Hp:]
                n = jnp.tanh(gx_t[:, 2 * Hp:] + r * gh[:, 2 * Hp:])
                h = n + z * (h - n)                               # == (1-z)*n + z*h
                if not last_layer:
                    hs.append(h)
            if not last_layer:
                h_all = jnp.concatenate(hs, axis=0)               # (T*Bp, Hp)

        # ---- out_z MLP head (last timestep of the last layer) ----------------
        y = h
        for i, (w_ref, b_ref) in enumerate(mlp):
            w = w_ref[...]
            y = jnp.dot(y.astype(w.dtype), w,
                        preferred_element_type=jnp.float32) + b_ref[...]
            if i < n_lls - 1:
                y = jnp.maximum(y, 0.0)

        out_ref[...] = y.astype(out_ref.dtype)                    # lane-dense (Bp, Op)

    return kernel


# ------------------------------ forward wrapper ------------------------------
def zgru_forward(x_bti, packed):
    """x_bti: (B, T, input_size), batch-first like the PyTorch module."""
    B, T, I = x_bti.shape
    Hp, G, Op = packed["Hp"], packed["G"], packed["Op"]
    Bp = _round_up(B, 8)                       # sublane-aligned batch

    # Zero-pad the batch to Bp rows (padded rows are sliced off at the end).
    x_pad = jnp.zeros((Bp, T, I), jnp.float32).at[:B].set(x_bti.astype(jnp.float32))

    # Hoisted layer-0 input projection: one batched matmul over all timesteps
    # (serial dependence only starts at the hidden recurrence).
    gx0 = jnp.einsum("bti,ig->tbg", x_pad, packed["wi0"],
                     precision=lax.Precision.HIGHEST) + packed["bi0"]
    gx0 = gx0.reshape(T * Bp, G)                                   # (T*Bp, G)

    flat = [gx0]
    specs = [_full_spec((T * Bp, G))]
    for tup in packed["layers"]:
        for arr in tup:
            flat.append(arr)
            specs.append(_full_spec(arr.shape))
    for (w, b) in packed["mlp"]:
        flat.append(w)
        specs.append(_full_spec(w.shape))
        flat.append(b)
        specs.append(_full_spec(b.shape))

    kernel = _make_zgru_kernel(packed["n_layers"], packed["n_lls"], T, Bp, Hp)
    out = pl.pallas_call(
        kernel,
        out_shape=jax.ShapeDtypeStruct((Bp, Op), jnp.float32),
        in_specs=specs,
        out_specs=_full_spec((Bp, Op)),
        compiler_params=pltpu.CompilerParams(vmem_limit_bytes=32 * 1024 * 1024),
    )(*flat)
    return out[:B, :packed["output_size"]]


# --------------------------- parameter preparation ---------------------------
def init_raw_params(key, input_size, hidden_size, output_size, n_layers, n_lls):
    """Raw params in PyTorch layout: w_ih (3H,in), w_hh (3H,H), b_ih/b_hh (3H,)."""
    H = hidden_size
    k = 1.0 / math.sqrt(H)
    gru_raw = []
    for l in range(n_layers):
        in_sz = input_size if l == 0 else H
        keys = jax.random.split(jax.random.fold_in(key, l), 4)
        gru_raw.append(dict(
            w_ih=jax.random.uniform(keys[0], (3 * H, in_sz), jnp.float32, -k, k),
            w_hh=jax.random.uniform(keys[1], (3 * H, H), jnp.float32, -k, k),
            b_ih=jax.random.uniform(keys[2], (3 * H,), jnp.float32, -k, k),
            b_hh=jax.random.uniform(keys[3], (3 * H,), jnp.float32, -k, k),
        ))
    mlp_raw = []
    for i in range(n_lls):
        fan_in = H
        fan_out = H if i < n_lls - 1 else output_size
        kk = 1.0 / math.sqrt(fan_in)
        kw, kb = jax.random.split(jax.random.fold_in(key, 1000 + i))
        mlp_raw.append((
            jax.random.uniform(kw, (fan_out, fan_in), jnp.float32, -kk, kk),   # (out,in)
            jax.random.uniform(kb, (fan_out,), jnp.float32, -kk, kk),
        ))
    return gru_raw, mlp_raw


def pack_params(gru_raw, mlp_raw, input_size, hidden_size, output_size,
                weight_dtype=jnp.bfloat16):
    """Pack raw PyTorch-layout params into lane-padded, gate-concatenated form.

    Default weight_dtype=bfloat16 (MXU inputs only on every generation);
    gate elementwise math stays f32 in the kernel. Pass jnp.float32 for
    bit-level parity checks.
    """
    H = hidden_size
    Hp = _round_up(H, 128)
    G = 3 * Hp
    Op = _round_up(output_size, 128)
    n_layers = len(gru_raw)
    n_lls = len(mlp_raw)

    def pack_w(w_gates, in_dim, in_dim_pad, dtype):
        out = jnp.zeros((in_dim_pad, G), jnp.float32)
        for g in range(3):                                    # r, z, n blocks
            out = out.at[:in_dim, g * Hp:g * Hp + H].set(
                w_gates[g * H:(g + 1) * H, :].T)
        return out.astype(dtype)

    def pack_b(b_gates):
        out = jnp.zeros((1, G), jnp.float32)
        for g in range(3):
            out = out.at[0, g * Hp:g * Hp + H].set(b_gates[g * H:(g + 1) * H])
        return out

    layers = []
    wi0 = bi0 = None
    for l, p in enumerate(gru_raw):
        in_sz = input_size if l == 0 else H
        in_pad = input_size if l == 0 else Hp
        # Layer-0 input weights stay f32: consumed by the hoisted XLA matmul.
        wi = pack_w(p["w_ih"], in_sz, in_pad, jnp.float32 if l == 0 else weight_dtype)
        bi = pack_b(p["b_ih"])
        wh = pack_w(p["w_hh"], H, Hp, weight_dtype)
        bh = pack_b(p["b_hh"])
        if l == 0:
            wi0, bi0 = wi, bi
            layers.append((wh, bh))
        else:
            layers.append((wi, bi, wh, bh))

    mlp = []
    for i, (w, b) in enumerate(mlp_raw):
        out_dim, in_dim = w.shape
        out_pad = Hp if i < n_lls - 1 else Op
        wp = (jnp.zeros((Hp, out_pad), jnp.float32)
              .at[:in_dim, :out_dim].set(w.T).astype(weight_dtype))
        bp = jnp.zeros((1, out_pad), jnp.float32).at[0, :out_dim].set(b)
        mlp.append((wp, bp))

    return dict(wi0=wi0, bi0=bi0, layers=layers, mlp=mlp,
                n_layers=n_layers, n_lls=n_lls,
                Hp=Hp, G=G, Op=Op, output_size=output_size)


# ---------------------------- pure-JAX reference -----------------------------
def zgru_reference(x_bti, gru_raw, mlp_raw):
    h_seq = jnp.transpose(x_bti, (1, 0, 2)).astype(jnp.float32)   # (T, B, I)
    B = x_bti.shape[0]
    for p in gru_raw:
        H = p["w_hh"].shape[1]
        w_ir, w_iz, w_in = jnp.split(p["w_ih"], 3, axis=0)
        w_hr, w_hz, w_hn = jnp.split(p["w_hh"], 3, axis=0)
        b_ir, b_iz, b_in_ = jnp.split(p["b_ih"], 3)
        b_hr, b_hz, b_hn = jnp.split(p["b_hh"], 3)

        def step(h, x_t, w_ir=w_ir, w_iz=w_iz, w_in=w_in,
                 w_hr=w_hr, w_hz=w_hz, w_hn=w_hn,
                 b_ir=b_ir, b_iz=b_iz, b_in_=b_in_,
                 b_hr=b_hr, b_hz=b_hz, b_hn=b_hn):
            r = jax.nn.sigmoid(x_t @ w_ir.T + b_ir + h @ w_hr.T + b_hr)
            z = jax.nn.sigmoid(x_t @ w_iz.T + b_iz + h @ w_hz.T + b_hz)
            n = jnp.tanh(x_t @ w_in.T + b_in_ + r * (h @ w_hn.T + b_hn))
            h_new = (1.0 - z) * n + z * h
            return h_new, h_new

        _, h_seq = lax.scan(step, jnp.zeros((B, H), jnp.float32), h_seq)
    y = h_seq[-1]
    n_mlp = len(mlp_raw)
    for i, (w, b) in enumerate(mlp_raw):
        y = y @ w.T + b
        if i < n_mlp - 1:
            y = jnp.maximum(y, 0.0)
    return y


# ----------------------------------- main ------------------------------------
if __name__ == "__main__":
    B, T = 2, 8                     # batch, sequence length
    INPUT, HIDDEN, OUTPUT = 16, 32, 10
    N_LAYERS, N_LLS = 2, 1          # n_lls=1 -> out_z is a single Linear (default)

    root = jax.random.PRNGKey(0)
    kx, kp = jax.random.split(root)
    x = jax.random.normal(kx, (B, T, INPUT), dtype=jnp.float32)

    gru_raw, mlp_raw = init_raw_params(kp, INPUT, HIDDEN, OUTPUT, N_LAYERS, N_LLS)
    z_ref = zgru_reference(x, gru_raw, mlp_raw)

    # Default: bf16 weights (MXU inputs), f32 gate math. Looser tolerance since
    # bf16 rounding of h compounds through the recurrence (expected).
    packed_bf16 = pack_params(gru_raw, mlp_raw, INPUT, HIDDEN, OUTPUT)
    z_bf16 = jax.block_until_ready(
        jax.jit(lambda xx: zgru_forward(xx, packed_bf16))(x))
    assert z_bf16.shape == (B, OUTPUT)
    assert bool(jnp.allclose(z_bf16, z_ref, rtol=5e-2, atol=5e-2))

    # Tighter numeric parity check with f32 weights.
    packed_f32 = pack_params(gru_raw, mlp_raw, INPUT, HIDDEN, OUTPUT,
                             weight_dtype=jnp.float32)
    z_f32 = jax.block_until_ready(
        jax.jit(lambda xx: zgru_forward(xx, packed_f32))(x))
    assert bool(jnp.allclose(z_f32, z_ref, rtol=1e-2, atol=1e-2))

    print("KERNEL_OK")
</pallas_src>

<mosaic_0001>
module attributes {stable_mosaic.version = 11 : i64} {
  func.func @kernel(%arg0: memref<64x384xf32, #tpu.memory_space<vmem>>, %arg1: memref<128x384xbf16, #tpu.memory_space<vmem>>, %arg2: memref<1x384xf32, #tpu.memory_space<vmem>>, %arg3: memref<128x384xbf16, #tpu.memory_space<vmem>>, %arg4: memref<1x384xf32, #tpu.memory_space<vmem>>, %arg5: memref<128x384xbf16, #tpu.memory_space<vmem>>, %arg6: memref<1x384xf32, #tpu.memory_space<vmem>>, %arg7: memref<128x128xbf16, #tpu.memory_space<vmem>>, %arg8: memref<1x128xf32, #tpu.memory_space<vmem>>, %arg9: memref<8x128xf32, #tpu.memory_space<vmem>>) attributes {dimension_semantics = [], scalar_prefetch = 0 : i64, scratch_operands = 0 : i64, tpu.core_type = #tpu.core_type<tc>} {
    %c0 = arith.constant 0 : index
    %c0_0 = arith.constant 0 : index
    %0 = vector.load %arg0[%c0, %c0_0] : memref<64x384xf32, #tpu.memory_space<vmem>>, vector<64x384xf32>
    %c0_1 = arith.constant 0 : index
    %c0_2 = arith.constant 0 : index
    %1 = vector.load %arg1[%c0_1, %c0_2] : memref<128x384xbf16, #tpu.memory_space<vmem>>, vector<128x384xbf16>
    %c0_3 = arith.constant 0 : index
    %c0_4 = arith.constant 0 : index
    %2 = vector.load %arg2[%c0_3, %c0_4] : memref<1x384xf32, #tpu.memory_space<vmem>>, vector<1x384xf32>
    %3 = vector.shape_cast %2 : vector<1x384xf32> to vector<1x384xf32>
    %4 = vector.broadcast %3 : vector<1x384xf32> to vector<8x384xf32>
    %cst = arith.constant 0.000000e+00 : f32
    %5 = vector.broadcast %cst : f32 to vector<8x128xf32>
    %6 = vector.extract_strided_slice %0 {offsets = [0, 0], sizes = [8, 384], strides = [1, 1]} : vector<64x384xf32> to vector<8x384xf32>
    %7 = arith.truncf %5 : vector<8x128xf32> to vector<8x128xbf16>
    %cst_5 = arith.constant dense<0.000000e+00> : vector<8x384xf32>
    %8 = tpu.matmul %7, %1, %cst_5 {dimension_numbers = #tpu.dot_dimension_numbers<[1], [0], [0], [1], [0, 0, 1, 1], [], []>} : vector<8x128xbf16>, vector<128x384xbf16>, vector<8x384xf32> -> vector<8x384xf32>
    %9 = arith.addf %8, %4 : vector<8x384xf32>
    %10 = vector.extract_strided_slice %6 {offsets = [0, 0], sizes = [8, 256], strides = [1, 1]} : vector<8x384xf32> to vector<8x256xf32>
    %11 = vector.extract_strided_slice %9 {offsets = [0, 0], sizes = [8, 256], strides = [1, 1]} : vector<8x384xf32> to vector<8x256xf32>
    %12 = arith.addf %10, %11 : vector<8x256xf32>
    %13 = arith.negf %12 : vector<8x256xf32>
    %14 = math.exp %13 : vector<8x256xf32>
    %cst_6 = arith.constant 1.000000e+00 : f32
    %15 = vector.broadcast %cst_6 : f32 to vector<8x256xf32>
    %16 = arith.addf %15, %14 : vector<8x256xf32>
    %17 = arith.divf %15, %16 : vector<8x256xf32>
    %18 = vector.extract_strided_slice %17 {offsets = [0, 0], sizes = [8, 128], strides = [1, 1]} : vector<8x256xf32> to vector<8x128xf32>
    %19 = vector.extract_strided_slice %17 {offsets = [0, 128], sizes = [8, 128], strides = [1, 1]} : vector<8x256xf32> to vector<8x128xf32>
    %20 = vector.extract_strided_slice %6 {offsets = [0, 256], sizes = [8, 128], strides = [1, 1]} : vector<8x384xf32> to vector<8x128xf32>
    %21 = vector.extract_strided_slice %9 {offsets = [0, 256], sizes = [8, 128], strides = [1, 1]} : vector<8x384xf32> to vector<8x128xf32>
    %22 = arith.mulf %18, %21 : vector<8x128xf32>
    %23 = arith.addf %20, %22 : vector<8x128xf32>
    %24 = math.tanh %23 : vector<8x128xf32>
    %25 = arith.subf %5, %24 : vector<8x128xf32>
    %26 = arith.mulf %19, %25 : vector<8x128xf32>
    %27 = arith.addf %24, %26 : vector<8x128xf32>
    %28 = vector.extract_strided_slice %0 {offsets = [8, 0], sizes = [8, 384], strides = [1, 1]} : vector<64x384xf32> to vector<8x384xf32>
    %29 = arith.truncf %27 : vector<8x128xf32> to vector<8x128xbf16>
    %cst_7 = arith.constant dense<0.000000e+00> : vector<8x384xf32>
    %30 = tpu.matmul %29, %1, %cst_7 {dimension_numbers = #tpu.dot_dimension_numbers<[1], [0], [0], [1], [0, 0, 1, 1], [], []>} : vector<8x128xbf16>, vector<128x384xbf16>, vector<8x384xf32> -> vector<8x384xf32>
    %31 = arith.addf %30, %4 : vector<8x384xf32>
    %32 = vector.extract_strided_slice %28 {offsets = [0, 0], sizes = [8, 256], strides = [1, 1]} : vector<8x384xf32> to vector<8x256xf32>
    %33 = vector.extract_strided_slice %31 {offsets = [0, 0], sizes = [8, 256], strides = [1, 1]} : vector<8x384xf32> to vector<8x256xf32>
    %34 = arith.addf %32, %33 : vector<8x256xf32>
    %35 = arith.negf %34 : vector<8x256xf32>
    %36 = math.exp %35 : vector<8x256xf32>
    %cst_8 = arith.constant 1.000000e+00 : f32
    %37 = vector.broadcast %cst_8 : f32 to vector<8x256xf32>
    %38 = arith.addf %37, %36 : vector<8x256xf32>
    %39 = arith.divf %37, %38 : vector<8x256xf32>
    %40 = vector.extract_strided_slice %39 {offsets = [0, 0], sizes = [8, 128], strides = [1, 1]} : vector<8x256xf32> to vector<8x128xf32>
    %41 = vector.extract_strided_slice %39 {offsets = [0, 128], sizes = [8, 128], strides = [1, 1]} : vector<8x256xf32> to vector<8x128xf32>
    %42 = vector.extract_strided_slice %28 {offsets = [0, 256], sizes = [8, 128], strides = [1, 1]} : vector<8x384xf32> to vector<8x128xf32>
    %43 = vector.extract_strided_slice %31 {offsets = [0, 256], sizes = [8, 128], strides = [1, 1]} : vector<8x384xf32> to vector<8x128xf32>
    %44 = arith.mulf %40, %43 : vector<8x128xf32>
    %45 = arith.addf %42, %44 : vector<8x128xf32>
    %46 = math.tanh %45 : vector<8x128xf32>
    %47 = arith.subf %27, %46 : vector<8x128xf32>
    %48 = arith.mulf %41, %47 : vector<8x128xf32>
    %49 = arith.addf %46, %48 : vector<8x128xf32>
    %50 = vector.extract_strided_slice %0 {offsets = [16, 0], sizes = [8, 384], strides = [1, 1]} : vector<64x384xf32> to vector<8x384xf32>
    %51 = arith.truncf %49 : vector<8x128xf32> to vector<8x128xbf16>
    %cst_9 = arith.constant dense<0.000000e+00> : vector<8x384xf32>
    %52 = tpu.matmul %51, %1, %cst_9 {dimension_numbers = #tpu.dot_dimension_numbers<[1], [0], [0], [1], [0, 0, 1, 1], [], []>} : vector<8x128xbf16>, vector<128x384xbf16>, vector<8x384xf32> -> vector<8x384xf32>
    %53 = arith.addf %52, %4 : vector<8x384xf32>
    %54 = vector.extract_strided_slice %50 {offsets = [0, 0], sizes = [8, 256], strides = [1, 1]} : vector<8x384xf32> to vector<8x256xf32>
    %55 = vector.extract_strided_slice %53 {offsets = [0, 0], sizes = [8, 256], strides = [1, 1]} : vector<8x384xf32> to vector<8x256xf32>
    %56 = arith.addf %54, %55 : vector<8x256xf32>
    %57 = arith.negf %56 : vector<8x256xf32>
    %58 = math.exp %57 : vector<8x256xf32>
    %cst_10 = arith.constant 1.000000e+00 : f32
    %59 = vector.broadcast %cst_10 : f32 to vector<8x256xf32>
    %60 = arith.addf %59, %58 : vector<8x256xf32>
    %61 = arith.divf %59, %60 : vector<8x256xf32>
    %62 = vector.extract_strided_slice %61 {offsets = [0, 0], sizes = [8, 128], strides = [1, 1]} : vector<8x256xf32> to vector<8x128xf32>
    %63 = vector.extract_strided_slice %61 {offsets = [0, 128], sizes = [8, 128], strides = [1, 1]} : vector<8x256xf32> to vector<8x128xf32>
    %64 = vector.extract_strided_slice %50 {offsets = [0, 256], sizes = [8, 128], strides = [1, 1]} : vector<8x384xf32> to vector<8x128xf32>
    %65 = vector.extract_strided_slice %53 {offsets = [0, 256], sizes = [8, 128], strides = [1, 1]} : vector<8x384xf32> to vector<8x128xf32>
    %66 = arith.mulf %62, %65 : vector<8x128xf32>
    %67 = arith.addf %64, %66 : vector<8x128xf32>
    %68 = math.tanh %67 : vector<8x128xf32>
    %69 = arith.subf %49, %68 : vector<8x128xf32>
    %70 = arith.mulf %63, %69 : vector<8x128xf32>
    %71 = arith.addf %68, %70 : vector<8x128xf32>
    %72 = vector.extract_strided_slice %0 {offsets = [24, 0], sizes = [8, 384], strides = [1, 1]} : vector<64x384xf32> to vector<8x384xf32>
    %73 = arith.truncf %71 : vector<8x128xf32> to vector<8x128xbf16>
    %cst_11 = arith.constant dense<0.000000e+00> : vector<8x384xf32>
    %74 = tpu.matmul %73, %1, %cst_11 {dimension_numbers = #tpu.dot_dimension_numbers<[1], [0], [0], [1], [0, 0, 1, 1], [], []>} : vector<8x128xbf16>, vector<128x384xbf16>, vector<8x384xf32> -> vector<8x384xf32>
    %75 = arith.addf %74, %4 : vector<8x384xf32>
    %76 = vector.extract_strided_slice %72 {offsets = [0, 0], sizes = [8, 256], strides = [1, 1]} : vector<8x384xf32> to vector<8x256xf32>
    %77 = vector.extract_strided_slice %75 {offsets = [0, 0], sizes = [8, 256], strides = [1, 1]} : vector<8x384xf32> to vector<8x256xf32>
    %78 = arith.addf %76, %77 : vector<8x256xf32>
    %79 = arith.negf %78 : vector<8x256xf32>
    %80 = math.exp %79 : vector<8x256xf32>
    %cst_12 = arith.constant 1.000000e+00 : f32
    %81 = vector.broadcast %cst_12 : f32 to vector<8x256xf32>
    %82 = arith.addf %81, %80 : vector<8x256xf32>
    %83 = arith.divf %81, %82 : vector<8x256xf32>
    %84 = vector.extract_strided_slice %83 {offsets = [0, 0], sizes = [8, 128], strides = [1, 1]} : vector<8x256xf32> to vector<8x128xf32>
    %85 = vector.extract_strided_slice %83 {offsets = [0, 128], sizes = [8, 128], strides = [1, 1]} : vector<8x256xf32> to vector<8x128xf32>
    %86 = vector.extract_strided_slice %72 {offsets = [0, 256], sizes = [8, 128], strides = [1, 1]} : vector<8x384xf32> to vector<8x128xf32>
    %87 = vector.extract_strided_slice %75 {offsets = [0, 256], sizes = [8, 128], strides = [1, 1]} : vector<8x384xf32> to vector<8x128xf32>
    %88 = arith.mulf %84, %87 : vector<8x128xf32>
    %89 = arith.addf %86, %88 : vector<8x128xf32>
    %90 = math.tanh %89 : vector<8x128xf32>
    %91 = arith.subf %71, %90 : vector<8x128xf32>
    %92 = arith.mulf %85, %91 : vector<8x128xf32>
    %93 = arith.addf %90, %92 : vector<8x128xf32>
    %94 = vector.extract_strided_slice %0 {offsets = [32, 0], sizes = [8, 384], strides = [1, 1]} : vector<64x384xf32> to vector<8x384xf32>
    %95 = arith.truncf %93 : vector<8x128xf32> to vector<8x128xbf16>
    %cst_13 = arith.constant dense<0.000000e+00> : vector<8x384xf32>
    %96 = tpu.matmul %95, %1, %cst_13 {dimension_numbers = #tpu.dot_dimension_numbers<[1], [0], [0], [1], [0, 0, 1, 1], [], []>} : vector<8x128xbf16>, vector<128x384xbf16>, vector<8x384xf32> -> vector<8x384xf32>
    %97 = arith.addf %96, %4 : vector<8x384xf32>
    %98 = vector.extract_strided_slice %94 {offsets = [0, 0], sizes = [8, 256], strides = [1, 1]} : vector<8x384xf32> to vector<8x256xf32>
    %99 = vector.extract_strided_slice %97 {offsets = [0, 0], sizes = [8, 256], strides = [1, 1]} : vector<8x384xf32> to vector<8x256xf32>
    %100 = arith.addf %98, %99 : vector<8x256xf32>
    %101 = arith.negf %100 : vector<8x256xf32>
    %102 = math.exp %101 : vector<8x256xf32>
    %cst_14 = arith.constant 1.000000e+00 : f32
    %103 = vector.broadcast %cst_14 : f32 to vector<8x256xf32>
    %104 = arith.addf %103, %102 : vector<8x256xf32>
    %105 = arith.divf %103, %104 : vector<8x256xf32>
    %106 = vector.extract_strided_slice %105 {offsets = [0, 0], sizes = [8, 128], strides = [1, 1]} : vector<8x256xf32> to vector<8x128xf32>
    %107 = vector.extract_strided_slice %105 {offsets = [0, 128], sizes = [8, 128], strides = [1, 1]} : vector<8x256xf32> to vector<8x128xf32>
    %108 = vector.extract_strided_slice %94 {offsets = [0, 256], sizes = [8, 128], strides = [1, 1]} : vector<8x384xf32> to vector<8x128xf32>
    %109 = vector.extract_strided_slice %97 {offsets = [0, 256], sizes = [8, 128], strides = [1, 1]} : vector<8x384xf32> to vector<8x128xf32>
    %110 = arith.mulf %106, %109 : vector<8x128xf32>
    %111 = arith.addf %108, %110 : vector<8x128xf32>
    %112 = math.tanh %111 : vector<8x128xf32>
    %113 = arith.subf %93, %112 : vector<8x128xf32>
    %114 = arith.mulf %107, %113 : vector<8x128xf32>
    %115 = arith.addf %112, %114 : vector<8x128xf32>
    %116 = vector.extract_strided_slice %0 {offsets = [40, 0], sizes = [8, 384], strides = [1, 1]} : vector<64x384xf32> to vector<8x384xf32>
    %117 = arith.truncf %115 : vector<8x128xf32> to vector<8x128xbf16>
    %cst_15 = arith.constant dense<0.000000e+00> : vector<8x384xf32>
    %118 = tpu.matmul %117, %1, %cst_15 {dimension_numbers = #tpu.dot_dimension_numbers<[1], [0], [0], [1], [0, 0, 1, 1], [], []>} : vector<8x128xbf16>, vector<128x384xbf16>, vector<8x384xf32> -> vector<8x384xf32>
    %119 = arith.addf %118, %4 : vector<8x384xf32>
    %120 = vector.extract_strided_slice %116 {offsets = [0, 0], sizes = [8, 256], strides = [1, 1]} : vector<8x384xf32> to vector<8x256xf32>
    %121 = vector.extract_strided_slice %119 {offsets = [0, 0], sizes = [8, 256], strides = [1, 1]} : vector<8x384xf32> to vector<8x256xf32>
    %122 = arith.addf %120, %121 : vector<8x256xf32>
    %123 = arith.negf %122 : vector<8x256xf32>
    %124 = math.exp %123 : vector<8x256xf32>
    %cst_16 = arith.constant 1.000000e+00 : f32
    %125 = vector.broadcast %cst_16 : f32 to vector<8x256xf32>
    %126 = arith.addf %125, %124 : vector<8x256xf32>
    %127 = arith.divf %125, %126 : vector<8x256xf32>
    %128 = vector.extract_strided_slice %127 {offsets = [0, 0], sizes = [8, 128], strides = [1, 1]} : vector<8x256xf32> to vector<8x128xf32>
    %129 = vector.extract_strided_slice %127 {offsets = [0, 128], sizes = [8, 128], strides = [1, 1]} : vector<8x256xf32> to vector<8x128xf32>
    %130 = vector.extract_strided_slice %116 {offsets = [0, 256], sizes = [8, 128], strides = [1, 1]} : vector<8x384xf32> to vector<8x128xf32>
    %131 = vector.extract_strided_slice %119 {offsets = [0, 256], sizes = [8, 128], strides = [1, 1]} : vector<8x384xf32> to vector<8x128xf32>
    %132 = arith.mulf %128, %131 : vector<8x128xf32>
    %133 = arith.addf %130, %132 : vector<8x128xf32>
    %134 = math.tanh %133 : vector<8x128xf32>
    %135 = arith.subf %115, %134 : vector<8x128xf32>
    %136 = arith.mulf %129, %135 : vector<8x128xf32>
    %137 = arith.addf %134, %136 : vector<8x128xf32>
    %138 = vector.extract_strided_slice %0 {offsets = [48, 0], sizes = [8, 384], strides = [1, 1]} : vector<64x384xf32> to vector<8x384xf32>
    %139 = arith.truncf %137 : vector<8x128xf32> to vector<8x128xbf16>
    %cst_17 = arith.constant dense<0.000000e+00> : vector<8x384xf32>
    %140 = tpu.matmul %139, %1, %cst_17 {dimension_numbers = #tpu.dot_dimension_numbers<[1], [0], [0], [1], [0, 0, 1, 1], [], []>} : vector<8x128xbf16>, vector<128x384xbf16>, vector<8x384xf32> -> vector<8x384xf32>
    %141 = arith.addf %140, %4 : vector<8x384xf32>
    %142 = vector.extract_strided_slice %138 {offsets = [0, 0], sizes = [8, 256], strides = [1, 1]} : vector<8x384xf32> to vector<8x256xf32>
    %143 = vector.extract_strided_slice %141 {offsets = [0, 0], sizes = [8, 256], strides = [1, 1]} : vector<8x384xf32> to vector<8x256xf32>
    %144 = arith.addf %142, %143 : vector<8x256xf32>
    %145 = arith.negf %144 : vector<8x256xf32>
    %146 = math.exp %145 : vector<8x256xf32>
    %cst_18 = arith.constant 1.000000e+00 : f32
    %147 = vector.broadcast %cst_18 : f32 to vector<8x256xf32>
    %148 = arith.addf %147, %146 : vector<8x256xf32>
    %149 = arith.divf %147, %148 : vector<8x256xf32>
    %150 = vector.extract_strided_slice %149 {offsets = [0, 0], sizes = [8, 128], strides = [1, 1]} : vector<8x256xf32> to vector<8x128xf32>
    %151 = vector.extract_strided_slice %149 {offsets = [0, 128], sizes = [8, 128], strides = [1, 1]} : vector<8x256xf32> to vector<8x128xf32>
    %152 = vector.extract_strided_slice %138 {offsets = [0, 256], sizes = [8, 128], strides = [1, 1]} : vector<8x384xf32> to vector<8x128xf32>
    %153 = vector.extract_strided_slice %141 {offsets = [0, 256], sizes = [8, 128], strides = [1, 1]} : vector<8x384xf32> to vector<8x128xf32>
    %154 = arith.mulf %150, %153 : vector<8x128xf32>
    %155 = arith.addf %152, %154 : vector<8x128xf32>
    %156 = math.tanh %155 : vector<8x128xf32>
    %157 = arith.subf %137, %156 : vector<8x128xf32>
    %158 = arith.mulf %151, %157 : vector<8x128xf32>
    %159 = arith.addf %156, %158 : vector<8x128xf32>
    %160 = vector.extract_strided_slice %0 {offsets = [56, 0], sizes = [8, 384], strides = [1, 1]} : vector<64x384xf32> to vector<8x384xf32>
    %161 = arith.truncf %159 : vector<8x128xf32> to vector<8x128xbf16>
    %cst_19 = arith.constant dense<0.000000e+00> : vector<8x384xf32>
    %162 = tpu.matmul %161, %1, %cst_19 {dimension_numbers = #tpu.dot_dimension_numbers<[1], [0], [0], [1], [0, 0, 1, 1], [], []>} : vector<8x128xbf16>, vector<128x384xbf16>, vector<8x384xf32> -> vector<8x384xf32>
    %163 = arith.addf %162, %4 : vector<8x384xf32>
    %164 = vector.extract_strided_slice %160 {offsets = [0, 0], sizes = [8, 256], strides = [1, 1]} : vector<8x384xf32> to vector<8x256xf32>
    %165 = vector.extract_strided_slice %163 {offsets = [0, 0], sizes = [8, 256], strides = [1, 1]} : vector<8x384xf32> to vector<8x256xf32>
    %166 = arith.addf %164, %165 : vector<8x256xf32>
    %167 = arith.negf %166 : vector<8x256xf32>
    %168 = math.exp %167 : vector<8x256xf32>
    %cst_20 = arith.constant 1.000000e+00 : f32
    %169 = vector.broadcast %cst_20 : f32 to vector<8x256xf32>
    %170 = arith.addf %169, %168 : vector<8x256xf32>
    %171 = arith.divf %169, %170 : vector<8x256xf32>
    %172 = vector.extract_strided_slice %171 {offsets = [0, 0], sizes = [8, 128], strides = [1, 1]} : vector<8x256xf32> to vector<8x128xf32>
    %173 = vector.extract_strided_slice %171 {offsets = [0, 128], sizes = [8, 128], strides = [1, 1]} : vector<8x256xf32> to vector<8x128xf32>
    %174 = vector.extract_strided_slice %160 {offsets = [0, 256], sizes = [8, 128], strides = [1, 1]} : vector<8x384xf32> to vector<8x128xf32>
    %175 = vector.extract_strided_slice %163 {offsets = [0, 256], sizes = [8, 128], strides = [1, 1]} : vector<8x384xf32> to vector<8x128xf32>
    %176 = arith.mulf %172, %175 : vector<8x128xf32>
    %177 = arith.addf %174, %176 : vector<8x128xf32>
    %178 = math.tanh %177 : vector<8x128xf32>
    %179 = arith.subf %159, %178 : vector<8x128xf32>
    %180 = arith.mulf %173, %179 : vector<8x128xf32>
    %181 = arith.addf %178, %180 : vector<8x128xf32>
    %182 = tpu.concatenate %27, %49, %71, %93, %115, %137, %159, %181 in 0 : vector<8x128xf32>, vector<8x128xf32>, vector<8x128xf32>, vector<8x128xf32>, vector<8x128xf32>, vector<8x128xf32>, vector<8x128xf32>, vector<8x128xf32> -> vector<64x128xf32>
    %c0_21 = arith.constant 0 : index
    %c0_22 = arith.constant 0 : index
    %183 = vector.load %arg3[%c0_21, %c0_22] : memref<128x384xbf16, #tpu.memory_space<vmem>>, vector<128x384xbf16>
    %184 = arith.truncf %182 : vector<64x128xf32> to vector<64x128xbf16>
    %cst_23 = arith.constant dense<0.000000e+00> : vector<64x384xf32>
    %185 = tpu.matmul %184, %183, %cst_23 {dimension_numbers = #tpu.dot_dimension_numbers<[1], [0], [0], [1], [0, 0, 1, 1], [], []>} : vector<64x128xbf16>, vector<128x384xbf16>, vector<64x384xf32> -> vector<64x384xf32>
    %c0_24 = arith.constant 0 : index
    %c0_25 = arith.constant 0 : index
    %186 = vector.load %arg4[%c0_24, %c0_25] : memref<1x384xf32, #tpu.memory_space<vmem>>, vector<1x384xf32>
    %187 = vector.shape_cast %186 : vector<1x384xf32> to vector<1x384xf32>
    %188 = vector.broadcast %187 : vector<1x384xf32> to vector<64x384xf32>
    %189 = arith.addf %185, %188 : vector<64x384xf32>
    %c0_26 = arith.constant 0 : index
    %c0_27 = arith.constant 0 : index
    %190 = vector.load %arg5[%c0_26, %c0_27] : memref<128x384xbf16, #tpu.memory_space<vmem>>, vector<128x384xbf16>
    %c0_28 = arith.constant 0 : index
    %c0_29 = arith.constant 0 : index
    %191 = vector.load %arg6[%c0_28, %c0_29] : memref<1x384xf32, #tpu.memory_space<vmem>>, vector<1x384xf32>
    %192 = vector.shape_cast %191 : vector<1x384xf32> to vector<1x384xf32>
    %193 = vector.broadcast %192 : vector<1x384xf32> to vector<8x384xf32>
    %cst_30 = arith.constant 0.000000e+00 : f32
    %194 = vector.broadcast %cst_30 : f32 to vector<8x128xf32>
    %195 = vector.extract_strided_slice %189 {offsets = [0, 0], sizes = [8, 384], strides = [1, 1]} : vector<64x384xf32> to vector<8x384xf32>
    %196 = arith.truncf %194 : vector<8x128xf32> to vector<8x128xbf16>
    %cst_31 = arith.constant dense<0.000000e+00> : vector<8x384xf32>
    %197 = tpu.matmul %196, %190, %cst_31 {dimension_numbers = #tpu.dot_dimension_numbers<[1], [0], [0], [1], [0, 0, 1, 1], [], []>} : vector<8x128xbf16>, vector<128x384xbf16>, vector<8x384xf32> -> vector<8x384xf32>
    %198 = arith.addf %197, %193 : vector<8x384xf32>
    %199 = vector.extract_strided_slice %195 {offsets = [0, 0], sizes = [8, 256], strides = [1, 1]} : vector<8x384xf32> to vector<8x256xf32>
    %200 = vector.extract_strided_slice %198 {offsets = [0, 0], sizes = [8, 256], strides = [1, 1]} : vector<8x384xf32> to vector<8x256xf32>
    %201 = arith.addf %199, %200 : vector<8x256xf32>
    %202 = arith.negf %201 : vector<8x256xf32>
    %203 = math.exp %202 : vector<8x256xf32>
    %cst_32 = arith.constant 1.000000e+00 : f32
    %204 = vector.broadcast %cst_32 : f32 to vector<8x256xf32>
    %205 = arith.addf %204, %203 : vector<8x256xf32>
    %206 = arith.divf %204, %205 : vector<8x256xf32>
    %207 = vector.extract_strided_slice %206 {offsets = [0, 0], sizes = [8, 128], strides = [1, 1]} : vector<8x256xf32> to vector<8x128xf32>
    %208 = vector.extract_strided_slice %206 {offsets = [0, 128], sizes = [8, 128], strides = [1, 1]} : vector<8x256xf32> to vector<8x128xf32>
    %209 = vector.extract_strided_slice %195 {offsets = [0, 256], sizes = [8, 128], strides = [1, 1]} : vector<8x384xf32> to vector<8x128xf32>
    %210 = vector.extract_strided_slice %198 {offsets = [0, 256], sizes = [8, 128], strides = [1, 1]} : vector<8x384xf32> to vector<8x128xf32>
    %211 = arith.mulf %207, %210 : vector<8x128xf32>
    %212 = arith.addf %209, %211 : vector<8x128xf32>
    %213 = math.tanh %212 : vector<8x128xf32>
    %214 = arith.subf %194, %213 : vector<8x128xf32>
    %215 = arith.mulf %208, %214 : vector<8x128xf32>
    %216 = arith.addf %213, %215 : vector<8x128xf32>
    %217 = vector.extract_strided_slice %189 {offsets = [8, 0], sizes = [8, 384], strides = [1, 1]} : vector<64x384xf32> to vector<8x384xf32>
    %218 = arith.truncf %216 : vector<8x128xf32> to vector<8x128xbf16>
    %cst_33 = arith.constant dense<0.000000e+00> : vector<8x384xf32>
    %219 = tpu.matmul %218, %190, %cst_33 {dimension_numbers = #tpu.dot_dimension_numbers<[1], [0], [0], [1], [0, 0, 1, 1], [], []>} : vector<8x128xbf16>, vector<128x384xbf16>, vector<8x384xf32> -> vector<8x384xf32>
    %220 = arith.addf %219, %193 : vector<8x384xf32>
    %221 = vector.extract_strided_slice %217 {offsets = [0, 0], sizes = [8, 256], strides = [1, 1]} : vector<8x384xf32> to vector<8x256xf32>
    %222 = vector.extract_strided_slice %220 {offsets = [0, 0], sizes = [8, 256], strides = [1, 1]} : vector<8x384xf32> to vector<8x256xf32>
    %223 = arith.addf %221, %222 : vector<8x256xf32>
    %224 = arith.negf %223 : vector<8x256xf32>
    %225 = math.exp %224 : vector<8x256xf32>
    %cst_34 = arith.constant 1.000000e+00 : f32
    %226 = vector.broadcast %cst_34 : f32 to vector<8x256xf32>
    %227 = arith.addf %226, %225 : vector<8x256xf32>
    %228 = arith.divf %226, %227 : vector<8x256xf32>
    %229 = vector.extract_strided_slice %228 {offsets = [0, 0], sizes = [8, 128], strides = [1, 1]} : vector<8x256xf32> to vector<8x128xf32>
    %230 = vector.extract_strided_slice %228 {offsets = [0, 128], sizes = [8, 128], strides = [1, 1]} : vector<8x256xf32> to vector<8x128xf32>
    %231 = vector.extract_strided_slice %217 {offsets = [0, 256], sizes = [8, 128], strides = [1, 1]} : vector<8x384xf32> to vector<8x128xf32>
    %232 = vector.extract_strided_slice %220 {offsets = [0, 256], sizes = [8, 128], strides = [1, 1]} : vector<8x384xf32> to vector<8x128xf32>
    %233 = arith.mulf %229, %232 : vector<8x128xf32>
    %234 = arith.addf %231, %233 : vector<8x128xf32>
    %235 = math.tanh %234 : vector<8x128xf32>
    %236 = arith.subf %216, %235 : vector<8x128xf32>
    %237 = arith.mulf %230, %236 : vector<8x128xf32>
    %238 = arith.addf %235, %237 : vector<8x128xf32>
    %239 = vector.extract_strided_slice %189 {offsets = [16, 0], sizes = [8, 384], strides = [1, 1]} : vector<64x384xf32> to vector<8x384xf32>
    %240 = arith.truncf %238 : vector<8x128xf32> to vector<8x128xbf16>
    %cst_35 = arith.constant dense<0.000000e+00> : vector<8x384xf32>
    %241 = tpu.matmul %240, %190, %cst_35 {dimension_numbers = #tpu.dot_dimension_numbers<[1], [0], [0], [1], [0, 0, 1, 1], [], []>} : vector<8x128xbf16>, vector<128x384xbf16>, vector<8x384xf32> -> vector<8x384xf32>
    %242 = arith.addf %241, %193 : vector<8x384xf32>
    %243 = vector.extract_strided_slice %239 {offsets = [0, 0], sizes = [8, 256], strides = [1, 1]} : vector<8x384xf32> to vector<8x256xf32>
    %244 = vector.extract_strided_slice %242 {offsets = [0, 0], sizes = [8, 256], strides = [1, 1]} : vector<8x384xf32> to vector<8x256xf32>
    %245 = arith.addf %243, %244 : vector<8x256xf32>
    %246 = arith.negf %245 : vector<8x256xf32>
    %247 = math.exp %246 : vector<8x256xf32>
    %cst_36 = arith.constant 1.000000e+00 : f32
    %248 = vector.broadcast %cst_36 : f32 to vector<8x256xf32>
    %249 = arith.addf %248, %247 : vector<8x256xf32>
    %250 = arith.divf %248, %249 : vector<8x256xf32>
    %251 = vector.extract_strided_slice %250 {offsets = [0, 0], sizes = [8, 128], strides = [1, 1]} : vector<8x256xf32> to vector<8x128xf32>
    %252 = vector.extract_strided_slice %250 {offsets = [0, 128], sizes = [8, 128], strides = [1, 1]} : vector<8x256xf32> to vector<8x128xf32>
    %253 = vector.extract_strided_slice %239 {offsets = [0, 256], sizes = [8, 128], strides = [1, 1]} : vector<8x384xf32> to vector<8x128xf32>
    %254 = vector.extract_strided_slice %242 {offsets = [0, 256], sizes = [8, 128], strides = [1, 1]} : vector<8x384xf32> to vector<8x128xf32>
    %255 = arith.mulf %251, %254 : vector<8x128xf32>
    %256 = arith.addf %253, %255 : vector<8x128xf32>
    %257 = math.tanh %256 : vector<8x128xf32>
    %258 = arith.subf %238, %257 : vector<8x128xf32>
    %259 = arith.mulf %252, %258 : vector<8x128xf32>
    %260 = arith.addf %257, %259 : vector<8x128xf32>
    %261 = vector.extract_strided_slice %189 {offsets = [24, 0], sizes = [8, 384], strides = [1, 1]} : vector<64x384xf32> to vector<8x384xf32>
    %262 = arith.truncf %260 : vector<8x128xf32> to vector<8x128xbf16>
    %cst_37 = arith.constant dense<0.000000e+00> : vector<8x384xf32>
    %263 = tpu.matmul %262, %190, %cst_37 {dimension_numbers = #tpu.dot_dimension_numbers<[1], [0], [0], [1], [0, 0, 1, 1], [], []>} : vector<8x128xbf16>, vector<128x384xbf16>, vector<8x384xf32> -> vector<8x384xf32>
    %264 = arith.addf %263, %193 : vector<8x384xf32>
    %265 = vector.extract_strided_slice %261 {offsets = [0, 0], sizes = [8, 256], strides = [1, 1]} : vector<8x384xf32> to vector<8x256xf32>
    %266 = vector.extract_strided_slice %264 {offsets = [0, 0], sizes = [8, 256], strides = [1, 1]} : vector<8x384xf32> to vector<8x256xf32>
    %267 = arith.addf %265, %266 : vector<8x256xf32>
    %268 = arith.negf %267 : vector<8x256xf32>
    %269 = math.exp %268 : vector<8x256xf32>
    %cst_38 = arith.constant 1.000000e+00 : f32
    %270 = vector.broadcast %cst_38 : f32 to vector<8x256xf32>
    %271 = arith.addf %270, %269 : vector<8x256xf32>
    %272 = arith.divf %270, %271 : vector<8x256xf32>
    %273 = vector.extract_strided_slice %272 {offsets = [0, 0], sizes = [8, 128], strides = [1, 1]} : vector<8x256xf32> to vector<8x128xf32>
    %274 = vector.extract_strided_slice %272 {offsets = [0, 128], sizes = [8, 128], strides = [1, 1]} : vector<8x256xf32> to vector<8x128xf32>
    %275 = vector.extract_strided_slice %261 {offsets = [0, 256], sizes = [8, 128], strides = [1, 1]} : vector<8x384xf32> to vector<8x128xf32>
    %276 = vector.extract_strided_slice %264 {offsets = [0, 256], sizes = [8, 128], strides = [1, 1]} : vector<8x384xf32> to vector<8x128xf32>
    %277 = arith.mulf %273, %276 : vector<8x128xf32>
    %278 = arith.addf %275, %277 : vector<8x128xf32>
    %279 = math.tanh %278 : vector<8x128xf32>
    %280 = arith.subf %260, %279 : vector<8x128xf32>
    %281 = arith.mulf %274, %280 : vector<8x128xf32>
    %282 = arith.addf %279, %281 : vector<8x128xf32>
    %283 = vector.extract_strided_slice %189 {offsets = [32, 0], sizes = [8, 384], strides = [1, 1]} : vector<64x384xf32> to vector<8x384xf32>
    %284 = arith.truncf %282 : vector<8x128xf32> to vector<8x128xbf16>
    %cst_39 = arith.constant dense<0.000000e+00> : vector<8x384xf32>
    %285 = tpu.matmul %284, %190, %cst_39 {dimension_numbers = #tpu.dot_dimension_numbers<[1], [0], [0], [1], [0, 0, 1, 1], [], []>} : vector<8x128xbf16>, vector<128x384xbf16>, vector<8x384xf32> -> vector<8x384xf32>
    %286 = arith.addf %285, %193 : vector<8x384xf32>
    %287 = vector.extract_strided_slice %283 {offsets = [0, 0], sizes = [8, 256], strides = [1, 1]} : vector<8x384xf32> to vector<8x256xf32>
    %288 = vector.extract_strided_slice %286 {offsets = [0, 0], sizes = [8, 256], strides = [1, 1]} : vector<8x384xf32> to vector<8x256xf32>
    %289 = arith.addf %287, %288 : vector<8x256xf32>
    %290 = arith.negf %289 : vector<8x256xf32>
    %291 = math.exp %290 : vector<8x256xf32>
    %cst_40 = arith.constant 1.000000e+00 : f32
    %292 = vector.broadcast %cst_40 : f32 to vector<8x256xf32>
    %293 = arith.addf %292, %291 : vector<8x256xf32>
    %294 = arith.divf %292, %293 : vector<8x256xf32>
    %295 = vector.extract_strided_slice %294 {offsets = [0, 0], sizes = [8, 128], strides = [1, 1]} : vector<8x256xf32> to vector<8x128xf32>
    %296 = vector.extract_strided_slice %294 {offsets = [0, 128], sizes = [8, 128], strides = [1, 1]} : vector<8x256xf32> to vector<8x128xf32>
    %297 = vector.extract_strided_slice %283 {offsets = [0, 256], sizes = [8, 128], strides = [1, 1]} : vector<8x384xf32> to vector<8x128xf32>
    %298 = vector.extract_strided_slice %286 {offsets = [0, 256], sizes = [8, 128], strides = [1, 1]} : vector<8x384xf32> to vector<8x128xf32>
    %299 = arith.mulf %295, %298 : vector<8x128xf32>
    %300 = arith.addf %297, %299 : vector<8x128xf32>
    %301 = math.tanh %300 : vector<8x128xf32>
    %302 = arith.subf %282, %301 : vector<8x128xf32>
    %303 = arith.mulf %296, %302 : vector<8x128xf32>
    %304 = arith.addf %301, %303 : vector<8x128xf32>
    %305 = vector.extract_strided_slice %189 {offsets = [40, 0], sizes = [8, 384], strides = [1, 1]} : vector<64x384xf32> to vector<8x384xf32>
    %306 = arith.truncf %304 : vector<8x128xf32> to vector<8x128xbf16>
    %cst_41 = arith.constant dense<0.000000e+00> : vector<8x384xf32>
    %307 = tpu.matmul %306, %190, %cst_41 {dimension_numbers = #tpu.dot_dimension_numbers<[1], [0], [0], [1], [0, 0, 1, 1], [], []>} : vector<8x128xbf16>, vector<128x384xbf16>, vector<8x384xf32> -> vector<8x384xf32>
    %308 = arith.addf %307, %193 : vector<8x384xf32>
    %309 = vector.extract_strided_slice %305 {offsets = [0, 0], sizes = [8, 256], strides = [1, 1]} : vector<8x384xf32> to vector<8x256xf32>
    %310 = vector.extract_strided_slice %308 {offsets = [0, 0], sizes = [8, 256], strides = [1, 1]} : vector<8x384xf32> to vector<8x256xf32>
    %311 = arith.addf %309, %310 : vector<8x256xf32>
    %312 = arith.negf %311 : vector<8x256xf32>
    %313 = math.exp %312 : vector<8x256xf32>
    %cst_42 = arith.constant 1.000000e+00 : f32
    %314 = vector.broadcast %cst_42 : f32 to vector<8x256xf32>
    %315 = arith.addf %314, %313 : vector<8x256xf32>
    %316 = arith.divf %314, %315 : vector<8x256xf32>
    %317 = vector.extract_strided_slice %316 {offsets = [0, 0], sizes = [8, 128], strides = [1, 1]} : vector<8x256xf32> to vector<8x128xf32>
    %318 = vector.extract_strided_slice %316 {offsets = [0, 128], sizes = [8, 128], strides = [1, 1]} : vector<8x256xf32> to vector<8x128xf32>
    %319 = vector.extract_strided_slice %305 {offsets = [0, 256], sizes = [8, 128], strides = [1, 1]} : vector<8x384xf32> to vector<8x128xf32>
    %320 = vector.extract_strided_slice %308 {offsets = [0, 256], sizes = [8, 128], strides = [1, 1]} : vector<8x384xf32> to vector<8x128xf32>
    %321 = arith.mulf %317, %320 : vector<8x128xf32>
    %322 = arith.addf %319, %321 : vector<8x128xf32>
    %323 = math.tanh %322 : vector<8x128xf32>
    %324 = arith.subf %304, %323 : vector<8x128xf32>
    %325 = arith.mulf %318, %324 : vector<8x128xf32>
    %326 = arith.addf %323, %325 : vector<8x128xf32>
    %327 = vector.extract_strided_slice %189 {offsets = [48, 0], sizes = [8, 384], strides = [1, 1]} : vector<64x384xf32> to vector<8x384xf32>
    %328 = arith.truncf %326 : vector<8x128xf32> to vector<8x128xbf16>
    %cst_43 = arith.constant dense<0.000000e+00> : vector<8x384xf32>
    %329 = tpu.matmul %328, %190, %cst_43 {dimension_numbers = #tpu.dot_dimension_numbers<[1], [0], [0], [1], [0, 0, 1, 1], [], []>} : vector<8x128xbf16>, vector<128x384xbf16>, vector<8x384xf32> -> vector<8x384xf32>
    %330 = arith.addf %329, %193 : vector<8x384xf32>
    %331 = vector.extract_strided_slice %327 {offsets = [0, 0], sizes = [8, 256], strides = [1, 1]} : vector<8x384xf32> to vector<8x256xf32>
    %332 = vector.extract_strided_slice %330 {offsets = [0, 0], sizes = [8, 256], strides = [1, 1]} : vector<8x384xf32> to vector<8x256xf32>
    %333 = arith.addf %331, %332 : vector<8x256xf32>
    %334 = arith.negf %333 : vector<8x256xf32>
    %335 = math.exp %334 : vector<8x256xf32>
    %cst_44 = arith.constant 1.000000e+00 : f32
    %336 = vector.broadcast %cst_44 : f32 to vector<8x256xf32>
    %337 = arith.addf %336, %335 : vector<8x256xf32>
    %338 = arith.divf %336, %337 : vector<8x256xf32>
    %339 = vector.extract_strided_slice %338 {offsets = [0, 0], sizes = [8, 128], strides = [1, 1]} : vector<8x256xf32> to vector<8x128xf32>
    %340 = vector.extract_strided_slice %338 {offsets = [0, 128], sizes = [8, 128], strides = [1, 1]} : vector<8x256xf32> to vector<8x128xf32>
    %341 = vector.extract_strided_slice %327 {offsets = [0, 256], sizes = [8, 128], strides = [1, 1]} : vector<8x384xf32> to vector<8x128xf32>
    %342 = vector.extract_strided_slice %330 {offsets = [0, 256], sizes = [8, 128], strides = [1, 1]} : vector<8x384xf32> to vector<8x128xf32>
    %343 = arith.mulf %339, %342 : vector<8x128xf32>
    %344 = arith.addf %341, %343 : vector<8x128xf32>
    %345 = math.tanh %344 : vector<8x128xf32>
    %346 = arith.subf %326, %345 : vector<8x128xf32>
    %347 = arith.mulf %340, %346 : vector<8x128xf32>
    %348 = arith.addf %345, %347 : vector<8x128xf32>
    %349 = vector.extract_strided_slice %189 {offsets = [56, 0], sizes = [8, 384], strides = [1, 1]} : vector<64x384xf32> to vector<8x384xf32>
    %350 = arith.truncf %348 : vector<8x128xf32> to vector<8x128xbf16>
    %cst_45 = arith.constant dense<0.000000e+00> : vector<8x384xf32>
    %351 = tpu.matmul %350, %190, %cst_45 {dimension_numbers = #tpu.dot_dimension_numbers<[1], [0], [0], [1], [0, 0, 1, 1], [], []>} : vector<8x128xbf16>, vector<128x384xbf16>, vector<8x384xf32> -> vector<8x384xf32>
    %352 = arith.addf %351, %193 : vector<8x384xf32>
    %353 = vector.extract_strided_slice %349 {offsets = [0, 0], sizes = [8, 256], strides = [1, 1]} : vector<8x384xf32> to vector<8x256xf32>
    %354 = vector.extract_strided_slice %352 {offsets = [0, 0], sizes = [8, 256], strides = [1, 1]} : vector<8x384xf32> to vector<8x256xf32>
    %355 = arith.addf %353, %354 : vector<8x256xf32>
    %356 = arith.negf %355 : vector<8x256xf32>
    %357 = math.exp %356 : vector<8x256xf32>
    %cst_46 = arith.constant 1.000000e+00 : f32
    %358 = vector.broadcast %cst_46 : f32 to vector<8x256xf32>
    %359 = arith.addf %358, %357 : vector<8x256xf32>
    %360 = arith.divf %358, %359 : vector<8x256xf32>
    %361 = vector.extract_strided_slice %360 {offsets = [0, 0], sizes = [8, 128], strides = [1, 1]} : vector<8x256xf32> to vector<8x128xf32>
    %362 = vector.extract_strided_slice %360 {offsets = [0, 128], sizes = [8, 128], strides = [1, 1]} : vector<8x256xf32> to vector<8x128xf32>
    %363 = vector.extract_strided_slice %349 {offsets = [0, 256], sizes = [8, 128], strides = [1, 1]} : vector<8x384xf32> to vector<8x128xf32>
    %364 = vector.extract_strided_slice %352 {offsets = [0, 256], sizes = [8, 128], strides = [1, 1]} : vector<8x384xf32> to vector<8x128xf32>
    %365 = arith.mulf %361, %364 : vector<8x128xf32>
    %366 = arith.addf %363, %365 : vector<8x128xf32>
    %367 = math.tanh %366 : vector<8x128xf32>
    %368 = arith.subf %348, %367 : vector<8x128xf32>
    %369 = arith.mulf %362, %368 : vector<8x128xf32>
    %370 = arith.addf %367, %369 : vector<8x128xf32>
    %c0_47 = arith.constant 0 : index
    %c0_48 = arith.constant 0 : index
    %371 = vector.load %arg7[%c0_47, %c0_48] : memref<128x128xbf16, #tpu.memory_space<vmem>>, vector<128x128xbf16>
    %372 = arith.truncf %370 : vector<8x128xf32> to vector<8x128xbf16>
    %cst_49 = arith.constant dense<0.000000e+00> : vector<8x128xf32>
    %373 = tpu.matmul %372, %371, %cst_49 {dimension_numbers = #tpu.dot_dimension_numbers<[1], [0], [0], [1], [0, 0, 1, 1], [], []>} : vector<8x128xbf16>, vector<128x128xbf16>, vector<8x128xf32> -> vector<8x128xf32>
    %c0_50 = arith.constant 0 : index
    %c0_51 = arith.constant 0 : index
    %374 = vector.load %arg8[%c0_50, %c0_51] : memref<1x128xf32, #tpu.memory_space<vmem>>, vector<1x128xf32>
    %375 = vector.broadcast %374 : vector<1x128xf32> to vector<8x128xf32>
    %376 = arith.addf %373, %375 : vector<8x128xf32>
    %c0_52 = arith.constant 0 : index
    %c0_53 = arith.constant 0 : index
    %377 = vector.load %arg9[%c0_52, %c0_53] : memref<8x128xf32, #tpu.memory_space<vmem>>, vector<8x128xf32>
    tpu.vector_store %arg9[%c0_52, %c0_53], %376 {strides = array<i32>} : memref<8x128xf32, #tpu.memory_space<vmem>>, vector<8x128xf32>,
    return
  }
}

</mosaic_0001>

<bundles_post_ra>
// kernel: _lambda_.1
= control target key start
LH: loop header
LB: loop body
LE: loop exit
PB: predicated region body
PF: predicated region fallthrough
CT: control target
= control target key end

     0   :  { %v4811_v1 = vmov 0.0   ;;  %v4809_v2 = vmov 0   ;;  %vm3420_vm0 = vmmov 0   ;;  %v91_v26 = vlaneseq  ;;  %s4799_s1 = inlined_call_operand.vmem [shape: bf16[128,384], index: 1, kind: input, shape index: {}]   ;;  %s4800_s2 = inlined_call_operand.vmem [shape: f32[1,384], index: 2, kind: input, shape index: {}]   ;;  %s4801_s0 = inlined_call_operand.vmem [shape: f32[64,384], index: 0, kind: input, shape index: {}]   ;;  %s4802_s3 = inlined_call_operand.vmem [shape: bf16[128,384], index: 3, kind: input, shape index: {}]   ;;  %s4803_s5 = inlined_call_operand.vmem [shape: bf16[128,384], index: 5, kind: input, shape index: {}]   ;;  %s4804_s4 = inlined_call_operand.vmem [shape: f32[1,384], index: 4, kind: input, shape index: {}]   ;;  %s4805_s6 = inlined_call_operand.vmem [shape: f32[1,384], index: 6, kind: input, shape index: {}]   ;;  %s4806_s7 = inlined_call_operand.vmem [shape: bf16[128,128], index: 7, kind: input, shape index: {}]   ;;  %s4807_s8 = inlined_call_operand.vmem [shape: f32[1,128], index: 8, kind: input, shape index: {}]   ;;  %s4808_s9 = inlined_call_operand.vmem [shape: f32[8,128], index: 9, kind: output, shape index: {}]  }
   0x1   :  { %v3474_v0 = vld [vmem:[%s4799_s1 + $0x4] ss:$12 sps:$4 sm:$0xff]   ;;  %2755 = vmatprep.subr.bf16.mxu1 %v4811_v1  ;;  %266 = vmatprep.mubr.bf16.mxu0 %v4809_v2  ;;  %v3481_v3 = vld [vmem:[%s4799_s1] ss:$12 sps:$4 sm:$0xff]   ;;  %v3489_v4 = vld [vmem:[%s4799_s1 + $0x1c] ss:$12 sps:$4 sm:$0xff]  }
   0x2   :  { %2771 = vmatprep.mubr.msk.bf16.mxu1 %vm3420_vm0, %v4811_v1  ;;  %234 = vmatprep.subr.bf16.mxu0 %v3474_v0  ;;  %v3495_v5 = vld [vmem:[%s4799_s1 + $0x18] ss:$12 sps:$4 sm:$0xff]   ;;  %v3501_v6 = vld [vmem:[%s4799_s1 + $0x34] ss:$12 sps:$4 sm:$0xff]   ;;  %v3507_v7 = vld [vmem:[%s4799_s1 + $0x30] ss:$12 sps:$4 sm:$0xff]  }
   0x3   :  { %235 = vmatpush1.bf16.msra.mxu0 %v3481_v3  ;;  %v3513_v8 = vld [vmem:[%s4799_s1 + $0x4c] ss:$12 sps:$4 sm:$0xff]   ;;  %v3518_v9 = vld [vmem:[%s4799_s1 + $0x8] ss:$12 sps:$4 sm:$0xff]   ;;  %v3529_v11 = vld [vmem:[%s4799_s1 + $0x64] ss:$12 sps:$4 sm:$0xff]  }
   0x4   :  { %236 = vmatprep.subr.bf16.mxu0 %v3489_v4  ;;  %v3524_v10 = vld [vmem:[%s4799_s1 + $0x48] ss:$12 sps:$4 sm:$0xff]   ;;  %2756 = vmatpush3.bf16.msra.mxu1 %v3518_v9  ;;  %v3536_v12 = vld [vmem:[%s4799_s1 + $0x20] ss:$12 sps:$4 sm:$0xff]   ;;  %v3555_v15 = vld [vmem:[%s4799_s1 + $0x38] ss:$12 sps:$4 sm:$0xff]  }
   0x5   :  { %2757 = vmatprep.subr.bf16.mxu1 %v4811_v1  ;;  %v3542_v13 = vld [vmem:[%s4799_s1 + $0x60] ss:$12 sps:$4 sm:$0xff]   ;;  %v3548_v14 = vld [vmem:[%s4799_s1 + $0x7c] ss:$12 sps:$4 sm:$0xff]   ;;  %v3562_v16 = vld [vmem:[%s4799_s1 + $0x78] ss:$12 sps:$4 sm:$0xff]  }
   0x6   :  { %v3568_v17 = vld [vmem:[%s4799_s1 + $0x94] ss:$12 sps:$4 sm:$0xff]   ;;  %v3574_v18 = vld [vmem:[%s4799_s1 + $0x50] ss:$12 sps:$4 sm:$0xff]   ;;  %v3587_v20 = vld [vmem:[%s4799_s1 + $0xac] ss:$12 sps:$4 sm:$0xff]  }
   0x7   :  { %237 = vmatpush1.bf16.msra.mxu0 %v3495_v5  ;;  %v3581_v19 = vld [vmem:[%s4799_s1 + $0x90] ss:$12 sps:$4 sm:$0xff]   ;;  %v3593_v21 = vld [vmem:[%s4799_s1 + $0x68] ss:$12 sps:$4 sm:$0xff]   ;;  %v3607_v23 = vld [vmem:[%s4799_s1 + $0x80] ss:$12 sps:$4 sm:$0xff]  }
   0x8   :  { %238 = vmatprep.subr.bf16.mxu0 %v3501_v6  ;;  %2758 = vmatpush3.bf16.msra.mxu1 %v3536_v12  ;;  %v3600_v22 = vld [vmem:[%s4799_s1 + $0xa8] ss:$12 sps:$4 sm:$0xff]   ;;  %v3615_v24 = vld [vmem:[%s4799_s1 + $0x98] ss:$12 sps:$4 sm:$0xff]   ;;  %v3626_v25 = vld [vmem:[%s4799_s1 + $0xb0] ss:$12 sps:$4 sm:$0xff]  }
   0x9   :  { %2759 = vmatprep.subr.bf16.mxu1 %v4811_v1  ;;  %v92_v27 = vshrl.u32 %v91_v26, 7  ;;  %v89_v29 = vld [vmem:[%s4800_s2] sm:$0x7]  ;;  %v34_v42 = vld [vmem:[%s4801_s0 + $0x8] sm:$0xff]  ;;  %v35_v56 = vld [vmem:[%s4801_s0 + $0x10] sm:$0xff] }
   0xa   :  { %v33_v32 = vld [vmem:[%s4801_s0] sm:$0xff] }
   0xb   :  { %239 = vmatpush1.bf16.msra.mxu0 %v3507_v7  ;;  %v3665_v28 = vsub.s32 0, %v92_v27  ;;  %v3673_v31 = vsub.s32 1, %v92_v27  ;;  %v3686_v51 = vsub.s32 2, %v92_v27 }
   0xc   :  { %240 = vmatprep.subr.bf16.mxu0 %v3513_v8  ;;  %2760 = vmatpush3.bf16.msra.mxu1 %v3555_v15 }
   0xd   :  { %2761 = vmatprep.subr.bf16.mxu1 %v4811_v1  ;;  %v3671_v30 = vrot.slane %v89_v29, %v3665_v28  ;;  %v3680_v38 = vrot.slane %v89_v29, %v3673_v31  ;;  %v3689_v52 = vrot.slane %v89_v29, %v3686_v51  ;;  %v36_v29 = vld [vmem:[%s4801_s0 + $0x18] sm:$0xff] }
   0xf   :  { %241 = vmatpush1.bf16.msra.mxu0 %v3524_v10 }
  0x10   :  { %242 = vmatprep.subr.bf16.mxu0 %v3529_v11  ;;  %2762 = vmatpush3.bf16.msra.mxu1 %v3574_v18 }
  0x11   :  { %2763 = vmatprep.subr.bf16.mxu1 %v4811_v1 }
  0x13   :  { %243 = vmatpush1.bf16.msra.mxu0 %v3542_v13 }
  0x14   :  { %244 = vmatprep.subr.bf16.mxu0 %v3548_v14  ;;  %2764 = vmatpush3.bf16.msra.mxu1 %v3593_v21 }
  0x15   :  { %2765 = vmatprep.subr.bf16.mxu1 %v4811_v1 }
  0x17   :  { %245 = vmatpush1.bf16.msra.mxu0 %v3562_v16 }
  0x18   :  { %246 = vmatprep.subr.bf16.mxu0 %v3568_v17  ;;  %2766 = vmatpush3.bf16.msra.mxu1 %v3607_v23 }
  0x19   :  { %2767 = vmatprep.subr.bf16.mxu1 %v4811_v1 }
  0x1b   :  { %247 = vmatpush1.bf16.msra.mxu0 %v3581_v19 }
  0x1c   :  { %248 = vmatprep.subr.bf16.mxu0 %v3587_v20  ;;  %2768 = vmatpush3.bf16.msra.mxu1 %v3615_v24 }
  0x1d   :  { %2769 = vmatprep.subr.bf16.mxu1 %v4811_v1 }
  0x1f   :  { %249 = vmatpush1.bf16.msra.mxu0 %v3600_v22 }
  0x20   :  { %336 = vmatprep.subr.bf16.mxu0 %v3474_v0  ;;  %2770 = vmatpush3.bf16.msra.mxu1 %v3626_v25 }
  0x21   :  { %2775 = vmatprep.subr.bf16.mxu1 %v4811_v1 }
  0x22   :  { %267 = vmatmul.mubr.bf16.vlgmr.msra.gmra.mrb[0].mxu0 %v4809_v2 }
  0x23   :  { %337 = vmatpush1.bf16.msra.mxu0 %v3481_v3  ;;  %368 = vmatprep.mubr.bf16.mxu0 %v4809_v2 }
  0x24   :  { %338 = vmatprep.subr.bf16.mxu0 %v3489_v4  ;;  %2772 = vmatmul.mubr.bf16.vlgmr.msra.gmra.mrb[0].mxu1 %v4809_v2 }
  0x25   :  { %2776 = vmatpush3.bf16.msra.mxu1 %v3518_v9  ;;  %2791 = vmatprep.mubr.msk.bf16.mxu1 %vm3420_vm0, %v4811_v1 }
  0x26   :  { %2777 = vmatprep.subr.bf16.mxu1 %v4811_v1 }
  0x27   :  { %339 = vmatpush1.bf16.msra.mxu0 %v3495_v5 }
  0x28   :  { %340 = vmatprep.subr.bf16.mxu0 %v3501_v6 }
  0x29   :  { %2778 = vmatpush3.bf16.msra.mxu1 %v3536_v12 }
  0x2a   :  { %2779 = vmatprep.subr.bf16.mxu1 %v4811_v1 }
  0x2b   :  { %341 = vmatpush1.bf16.msra.mxu0 %v3507_v7 }
  0x2c   :  { %342 = vmatprep.subr.bf16.mxu0 %v3513_v8 }
  0x2d   :  { %2780 = vmatpush3.bf16.msra.mxu1 %v3555_v15 }
  0x2e   :  { %2781 = vmatprep.subr.bf16.mxu1 %v4811_v1 }
  0x2f   :  { %343 = vmatpush1.bf16.msra.mxu0 %v3524_v10 }
  0x30   :  { %344 = vmatprep.subr.bf16.mxu0 %v3529_v11 }
  0x31   :  { %2782 = vmatpush3.bf16.msra.mxu1 %v3574_v18 }
  0x32   :  { %2783 = vmatprep.subr.bf16.mxu1 %v4811_v1 }
  0x33   :  { %345 = vmatpush1.bf16.msra.mxu0 %v3542_v13 }
  0x34   :  { %346 = vmatprep.subr.bf16.mxu0 %v3548_v14 }
  0x35   :  { %2784 = vmatpush3.bf16.msra.mxu1 %v3593_v21 }
  0x36   :  { %2785 = vmatprep.subr.bf16.mxu1 %v4811_v1 }
  0x37   :  { %347 = vmatpush1.bf16.msra.mxu0 %v3562_v16 }
  0x38   :  { %348 = vmatprep.subr.bf16.mxu0 %v3568_v17 }
  0x39   :  { %2786 = vmatpush3.bf16.msra.mxu1 %v3607_v23 }
  0x3a   :  { %2787 = vmatprep.subr.bf16.mxu1 %v4811_v1 }
  0x3b   :  { %349 = vmatpush1.bf16.msra.mxu0 %v3581_v19 }
  0x3c   :  { %350 = vmatprep.subr.bf16.mxu0 %v3587_v20 }
  0x3d   :  { %2788 = vmatpush3.bf16.msra.mxu1 %v3615_v24 }
  0x3e   :  { %2789 = vmatprep.subr.bf16.mxu1 %v4811_v1 }
  0x3f   :  { %351 = vmatpush1.bf16.msra.mxu0 %v3600_v22 }
  0x40   :  { %438 = vmatprep.subr.bf16.mxu0 %v3474_v0 }
  0x41   :  { %2790 = vmatpush3.bf16.msra.mxu1 %v3626_v25 }
  0x42   :  { %2795 = vmatprep.subr.bf16.mxu1 %v4811_v1 }
  0xf5   :  { %v268_v33 = vpop.f32.mrb[0].mxu0 }
  0xf6   :  { %v269_v34 = vadd.f32 %v268_v33, %v3671_v30  ;;  %v270_v35 = vpop.f32.mrb[1].mxu0 }
  0xf7   :  { %v272_v36 = vpop.f32.mrb[2].mxu0  ;;  %v271_v41 = vadd.f32 %v270_v35, %v3680_v38  ;;  %v309_v43 = vpop.f32.mrb[0].mxu1 }
  0xf8   :  { %v315_v37 = vadd.f32 %v269_v34, %v33_v32  ;;  %v273_v39 = vpop.f32.mrb[3].mxu0  ;;  %v2773_v44 = vpop.f32.mrb[1].mxu1  ;;  %v310_v53 = vadd.f32 %v309_v43, %v3689_v52 }
  0xf9   :  { %v316_v45 = vadd.f32 %v271_v41, %v34_v42  ;;  %v312_v46 = vpop.f32.mrb[2].mxu1 }
  0xfa   :  { %v2501_v40 = vmul.f32 -1.442695, %v315_v37  ;;  %v2774_v47 = vpop.f32.mrb[3].mxu1 }
  0xfb   :  { %v2502_v48 = vmul.f32 -1.442695, %v316_v45  ;;  %v37_v45 = vld [vmem:[%s4801_s0 + $0x20] sm:$0xff] }
  0xfc   :  { %3226 = vpow2.f32 %v2501_v40 }
  0xfd   :  { %3228 = vpow2.f32 %v2502_v48 }
 0x106   :  { %v3227_v49 = vpop.eup %3226 }
 0x107   :  { %v323_v50 = vadd.f32 1.0, %v3227_v49  ;;  %v3229_v54 = vpop.eup %3228 }
 0x108   :  { %v324_v58 = vadd.f32 1.0, %v3229_v54 }
 0x109   :  { %3230 = vrcp.f32 %v323_v50 }
 0x113   :  { %v3231_v55 = vpop.eup %3230 }
 0x114   :  { %v329_v57 = vmul.f32 %v3231_v55, %v310_v53  ;;  %v38_v55 = vld [vmem:[%s4801_s0 + $0x28] sm:$0xff] }
 0x116   :  { %v330_v59 = vadd.f32 %v329_v57, %v35_v56 }
 0x118   :  { %3232 = vtanh.f32 %v330_v59 }
 0x119   :  { %3234 = vrcp.f32 %v324_v58 }
 0x122   :  { %v3233_v60 = vpop.eup %3232 }
 0x123   :  { %v332_v61 = vsub.f32 0.0, %v3233_v60  ;;  %v3235_v62 = vpop.eup %3234 }
 0x125   :  { %v333_v63 = vmul.f32 %v3235_v62, %v332_v61 }
 0x127   :  { %v3695_v26 = vadd.f32 %v3233_v60, %v333_v63 }
 0x129   :  { %v335_v27 = vpack.c.bf16 %v3695_v26, %v3695_v26 }
 0x12b   :  { %369 = vmatmul.mubr.bf16.vlgmr.msra.gmra.mrb[4].mxu0 %v335_v27  ;;  %2792 = vmatmul.mubr.bf16.vlgmr.msra.gmra.mrb[4].mxu1 %v335_v27 }
 0x12c   :  { %439 = vmatpush1.bf16.msra.mxu0 %v3481_v3  ;;  %2796 = vmatpush3.bf16.msra.mxu1 %v3518_v9 }
 0x12d   :  { %440 = vmatprep.subr.bf16.mxu0 %v3489_v4  ;;  %2797 = vmatprep.subr.bf16.mxu1 %v4811_v1 }
 0x12e   :  { %470 = vmatprep.mubr.bf16.mxu0 %v4809_v2  ;;  %2811 = vmatprep.mubr.msk.bf16.mxu1 %vm3420_vm0, %v4811_v1 }
 0x130   :  { %441 = vmatpush1.bf16.msra.mxu0 %v3495_v5  ;;  %2798 = vmatpush3.bf16.msra.mxu1 %v3536_v12 }
 0x131   :  { %442 = vmatprep.subr.bf16.mxu0 %v3501_v6  ;;  %2799 = vmatprep.subr.bf16.mxu1 %v4811_v1 }
 0x134   :  { %443 = vmatpush1.bf16.msra.mxu0 %v3507_v7  ;;  %2800 = vmatpush3.bf16.msra.mxu1 %v3555_v15 }
 0x135   :  { %444 = vmatprep.subr.bf16.mxu0 %v3513_v8  ;;  %2801 = vmatprep.subr.bf16.mxu1 %v4811_v1 }
 0x138   :  { %445 = vmatpush1.bf16.msra.mxu0 %v3524_v10  ;;  %2802 = vmatpush3.bf16.msra.mxu1 %v3574_v18 }
 0x139   :  { %446 = vmatprep.subr.bf16.mxu0 %v3529_v11  ;;  %2803 = vmatprep.subr.bf16.mxu1 %v4811_v1 }
 0x13c   :  { %447 = vmatpush1.bf16.msra.mxu0 %v3542_v13  ;;  %2804 = vmatpush3.bf16.msra.mxu1 %v3593_v21 }
 0x13d   :  { %448 = vmatprep.subr.bf16.mxu0 %v3548_v14  ;;  %2805 = vmatprep.subr.bf16.mxu1 %v4811_v1 }
 0x140   :  { %449 = vmatpush1.bf16.msra.mxu0 %v3562_v16  ;;  %2806 = vmatpush3.bf16.msra.mxu1 %v3607_v23 }
 0x141   :  { %450 = vmatprep.subr.bf16.mxu0 %v3568_v17  ;;  %2807 = vmatprep.subr.bf16.mxu1 %v4811_v1 }
 0x144   :  { %451 = vmatpush1.bf16.msra.mxu0 %v3581_v19  ;;  %2808 = vmatpush3.bf16.msra.mxu1 %v3615_v24 }
 0x145   :  { %452 = vmatprep.subr.bf16.mxu0 %v3587_v20  ;;  %2809 = vmatprep.subr.bf16.mxu1 %v4811_v1 }
 0x148   :  { %453 = vmatpush1.bf16.msra.mxu0 %v3600_v22  ;;  %2810 = vmatpush3.bf16.msra.mxu1 %v3626_v25 }
 0x149   :  { %540 = vmatprep.subr.bf16.mxu0 %v3474_v0  ;;  %2815 = vmatprep.subr.bf16.mxu1 %v4811_v1 }
 0x1fe   :  { %v370_v32 = vpop.f32.mrb[4].mxu0  ;;  %v411_v33 = vpop.f32.mrb[4].mxu1 }
 0x1ff   :  { %v371_v34 = vadd.f32 %v370_v32, %v3671_v30  ;;  %v372_v35 = vpop.f32.mrb[5].mxu0  ;;  %v2793_v36 = vpop.f32.mrb[5].mxu1  ;;  %v412_v53 = vadd.f32 %v411_v33, %v3689_v52 }
 0x200   :  { %v374_v37 = vpop.f32.mrb[6].mxu0  ;;  %v414_v39 = vpop.f32.mrb[6].mxu1  ;;  %v373_v44 = vadd.f32 %v372_v35, %v3680_v38 }
 0x201   :  { %v417_v40 = vadd.f32 %v371_v34, %v36_v29  ;;  %v375_v41 = vpop.f32.mrb[7].mxu0  ;;  %v2794_v42 = vpop.f32.mrb[7].mxu1  ;;  %v39_v29 = vld [vmem:[%s4801_s0 + $0x30] sm:$0xff] }
 0x202   :  { %v418_v46 = vadd.f32 %v373_v44, %v37_v45  ;;  %v40_v45 = vld [vmem:[%s4801_s0 + $0x38] sm:$0xff] }
 0x203   :  { %v2503_v43 = vmul.f32 -1.442695, %v417_v40 }
 0x204   :  { %v2504_v47 = vmul.f32 -1.442695, %v418_v46 }
 0x205   :  { %3236 = vpow2.f32 %v2503_v43 }
 0x206   :  { %3238 = vpow2.f32 %v2504_v47 }
 0x20f   :  { %v3237_v48 = vpop.eup %3236 }
 0x210   :  { %v425_v49 = vadd.f32 1.0, %v3237_v48  ;;  %v3239_v50 = vpop.eup %3238 }
 0x211   :  { %v426_v58 = vadd.f32 1.0, %v3239_v50 }
 0x212   :  { %3240 = vrcp.f32 %v425_v49 }
 0x21c   :  { %v3241_v54 = vpop.eup %3240 }
 0x21d   :  { %v431_v56 = vmul.f32 %v3241_v54, %v412_v53 }
 0x21f   :  { %v432_v57 = vadd.f32 %v431_v56, %v38_v55  ;;  %v41_v55 = vld [vmem:[%s4801_s0 + $0x40] sm:$0xff] }
 0x221   :  { %3242 = vtanh.f32 %v432_v57 }
 0x222   :  { %3244 = vrcp.f32 %v426_v58 }
 0x22b   :  { %v3243_v59 = vpop.eup %3242 }
 0x22c   :  { %v434_v60 = vsub.f32 %v3695_v26, %v3243_v59  ;;  %v3245_v61 = vpop.eup %3244 }
 0x22e   :  { %v435_v62 = vmul.f32 %v3245_v61, %v434_v60 }
 0x230   :  { %v3747_v63 = vadd.f32 %v3243_v59, %v435_v62 }
 0x232   :  { %v437_v27 = vpack.c.bf16 %v3747_v63, %v3747_v63 }
 0x234   :  { %471 = vmatmul.mubr.bf16.vlgmr.msra.gmra.mrb[8].mxu0 %v437_v27  ;;  %2812 = vmatmul.mubr.bf16.vlgmr.msra.gmra.mrb[8].mxu1 %v437_v27 }
 0x235   :  { %541 = vmatpush1.bf16.msra.mxu0 %v3481_v3  ;;  %2816 = vmatpush3.bf16.msra.mxu1 %v3518_v9 }
 0x236   :  { %542 = vmatprep.subr.bf16.mxu0 %v3489_v4  ;;  %2817 = vmatprep.subr.bf16.mxu1 %v4811_v1 }
 0x237   :  { %572 = vmatprep.mubr.bf16.mxu0 %v4809_v2  ;;  %2831 = vmatprep.mubr.msk.bf16.mxu1 %vm3420_vm0, %v4811_v1 }
 0x239   :  { %543 = vmatpush1.bf16.msra.mxu0 %v3495_v5  ;;  %2818 = vmatpush3.bf16.msra.mxu1 %v3536_v12 }
 0x23a   :  { %544 = vmatprep.subr.bf16.mxu0 %v3501_v6  ;;  %2819 = vmatprep.subr.bf16.mxu1 %v4811_v1 }
 0x23d   :  { %545 = vmatpush1.bf16.msra.mxu0 %v3507_v7  ;;  %2820 = vmatpush3.bf16.msra.mxu1 %v3555_v15 }
 0x23e   :  { %546 = vmatprep.subr.bf16.mxu0 %v3513_v8  ;;  %2821 = vmatprep.subr.bf16.mxu1 %v4811_v1 }
 0x241   :  { %547 = vmatpush1.bf16.msra.mxu0 %v3524_v10  ;;  %2822 = vmatpush3.bf16.msra.mxu1 %v3574_v18 }
 0x242   :  { %548 = vmatprep.subr.bf16.mxu0 %v3529_v11  ;;  %2823 = vmatprep.subr.bf16.mxu1 %v4811_v1 }
 0x245   :  { %549 = vmatpush1.bf16.msra.mxu0 %v3542_v13  ;;  %2824 = vmatpush3.bf16.msra.mxu1 %v3593_v21 }
 0x246   :  { %550 = vmatprep.subr.bf16.mxu0 %v3548_v14  ;;  %2825 = vmatprep.subr.bf16.mxu1 %v4811_v1 }
 0x249   :  { %551 = vmatpush1.bf16.msra.mxu0 %v3562_v16  ;;  %2826 = vmatpush3.bf16.msra.mxu1 %v3607_v23 }
 0x24a   :  { %552 = vmatprep.subr.bf16.mxu0 %v3568_v17  ;;  %2827 = vmatprep.subr.bf16.mxu1 %v4811_v1 }
 0x24d   :  { %553 = vmatpush1.bf16.msra.mxu0 %v3581_v19  ;;  %2828 = vmatpush3.bf16.msra.mxu1 %v3615_v24 }
 0x24e   :  { %554 = vmatprep.subr.bf16.mxu0 %v3587_v20  ;;  %2829 = vmatprep.subr.bf16.mxu1 %v4811_v1 }
 0x251   :  { %555 = vmatpush1.bf16.msra.mxu0 %v3600_v22  ;;  %2830 = vmatpush3.bf16.msra.mxu1 %v3626_v25 }
 0x252   :  { %642 = vmatprep.subr.bf16.mxu0 %v3474_v0  ;;  %2835 = vmatprep.subr.bf16.mxu1 %v4811_v1 }
 0x307   :  { %v472_v32 = vpop.f32.mrb[8].mxu0  ;;  %v513_v33 = vpop.f32.mrb[8].mxu1 }
 0x308   :  { %v473_v34 = vadd.f32 %v472_v32, %v3671_v30  ;;  %v474_v35 = vpop.f32.mrb[9].mxu0  ;;  %v2813_v36 = vpop.f32.mrb[9].mxu1  ;;  %v514_v53 = vadd.f32 %v513_v33, %v3689_v52  ;;  %v42_v32 = vld [vmem:[%s4801_s0 + $0x48] sm:$0xff] }
 0x309   :  { %v476_v37 = vpop.f32.mrb[10].mxu0  ;;  %v516_v39 = vpop.f32.mrb[10].mxu1  ;;  %v475_v44 = vadd.f32 %v474_v35, %v3680_v38 }
 0x30a   :  { %v519_v40 = vadd.f32 %v473_v34, %v39_v29  ;;  %v477_v41 = vpop.f32.mrb[11].mxu0  ;;  %v2814_v42 = vpop.f32.mrb[11].mxu1 }
 0x30b   :  { %v520_v46 = vadd.f32 %v475_v44, %v40_v45 }
 0x30c   :  { %v2505_v43 = vmul.f32 -1.442695, %v519_v40 }
 0x30d   :  { %v2506_v47 = vmul.f32 -1.442695, %v520_v46  ;;  %v43_v46 = vld [vmem:[%s4801_s0 + $0x50] sm:$0xff] }
 0x30e   :  { %3246 = vpow2.f32 %v2505_v43 }
 0x30f   :  { %3248 = vpow2.f32 %v2506_v47 }
 0x318   :  { %v3247_v48 = vpop.eup %3246 }
 0x319   :  { %v527_v49 = vadd.f32 1.0, %v3247_v48  ;;  %v3249_v50 = vpop.eup %3248 }
 0x31a   :  { %v528_v58 = vadd.f32 1.0, %v3249_v50 }
 0x31b   :  { %3250 = vrcp.f32 %v527_v49 }
 0x325   :  { %v3251_v54 = vpop.eup %3250 }
 0x326   :  { %v533_v56 = vmul.f32 %v3251_v54, %v514_v53 }
 0x328   :  { %v534_v57 = vadd.f32 %v533_v56, %v41_v55  ;;  %v44_v56 = vld [vmem:[%s4801_s0 + $0x58] sm:$0xff] }
 0x32a   :  { %3252 = vtanh.f32 %v534_v57 }
 0x32b   :  { %3254 = vrcp.f32 %v528_v58 }
 0x334   :  { %v3253_v59 = vpop.eup %3252 }
 0x335   :  { %v536_v60 = vsub.f32 %v3747_v63, %v3253_v59  ;;  %v3255_v61 = vpop.eup %3254 }
 0x337   :  { %v537_v62 = vmul.f32 %v3255_v61, %v536_v60 }
 0x339   :  { %v3799_v27 = vadd.f32 %v3253_v59, %v537_v62 }
 0x33b   :  { %v539_v29 = vpack.c.bf16 %v3799_v27, %v3799_v27 }
 0x33d   :  { %573 = vmatmul.mubr.bf16.vlgmr.msra.gmra.mrb[12].mxu0 %v539_v29  ;;  %2832 = vmatmul.mubr.bf16.vlgmr.msra.gmra.mrb[12].mxu1 %v539_v29 }
 0x33e   :  { %643 = vmatpush1.bf16.msra.mxu0 %v3481_v3  ;;  %2836 = vmatpush3.bf16.msra.mxu1 %v3518_v9 }
 0x33f   :  { %644 = vmatprep.subr.bf16.mxu0 %v3489_v4  ;;  %2837 = vmatprep.subr.bf16.mxu1 %v4811_v1 }
 0x340   :  { %674 = vmatprep.mubr.bf16.mxu0 %v4809_v2  ;;  %2851 = vmatprep.mubr.msk.bf16.mxu1 %vm3420_vm0, %v4811_v1 }
 0x342   :  { %645 = vmatpush1.bf16.msra.mxu0 %v3495_v5  ;;  %2838 = vmatpush3.bf16.msra.mxu1 %v3536_v12 }
 0x343   :  { %646 = vmatprep.subr.bf16.mxu0 %v3501_v6  ;;  %2839 = vmatprep.subr.bf16.mxu1 %v4811_v1 }
 0x346   :  { %647 = vmatpush1.bf16.msra.mxu0 %v3507_v7  ;;  %2840 = vmatpush3.bf16.msra.mxu1 %v3555_v15 }
 0x347   :  { %648 = vmatprep.subr.bf16.mxu0 %v3513_v8  ;;  %2841 = vmatprep.subr.bf16.mxu1 %v4811_v1 }
 0x34a   :  { %649 = vmatpush1.bf16.msra.mxu0 %v3524_v10  ;;  %2842 = vmatpush3.bf16.msra.mxu1 %v3574_v18 }
 0x34b   :  { %650 = vmatprep.subr.bf16.mxu0 %v3529_v11  ;;  %2843 = vmatprep.subr.bf16.mxu1 %v4811_v1 }
 0x34e   :  { %651 = vmatpush1.bf16.msra.mxu0 %v3542_v13  ;;  %2844 = vmatpush3.bf16.msra.mxu1 %v3593_v21 }
 0x34f   :  { %652 = vmatprep.subr.bf16.mxu0 %v3548_v14  ;;  %2845 = vmatprep.subr.bf16.mxu1 %v4811_v1 }
 0x352   :  { %653 = vmatpush1.bf16.msra.mxu0 %v3562_v16  ;;  %2846 = vmatpush3.bf16.msra.mxu1 %v3607_v23 }
 0x353   :  { %654 = vmatprep.subr.bf16.mxu0 %v3568_v17  ;;  %2847 = vmatprep.subr.bf16.mxu1 %v4811_v1 }
 0x356   :  { %655 = vmatpush1.bf16.msra.mxu0 %v3581_v19  ;;  %2848 = vmatpush3.bf16.msra.mxu1 %v3615_v24 }
 0x357   :  { %656 = vmatprep.subr.bf16.mxu0 %v3587_v20  ;;  %2849 = vmatprep.subr.bf16.mxu1 %v4811_v1 }
 0x35a   :  { %657 = vmatpush1.bf16.msra.mxu0 %v3600_v22  ;;  %2850 = vmatpush3.bf16.msra.mxu1 %v3626_v25 }
 0x35b   :  { %744 = vmatprep.subr.bf16.mxu0 %v3474_v0  ;;  %2855 = vmatprep.subr.bf16.mxu1 %v4811_v1 }
 0x410   :  { %v574_v33 = vpop.f32.mrb[12].mxu0  ;;  %v615_v34 = vpop.f32.mrb[12].mxu1 }
 0x411   :  { %v575_v35 = vadd.f32 %v574_v33, %v3671_v30  ;;  %v576_v36 = vpop.f32.mrb[13].mxu0  ;;  %v2833_v37 = vpop.f32.mrb[13].mxu1  ;;  %v616_v54 = vadd.f32 %v615_v34, %v3689_v52  ;;  %v45_v34 = vld [vmem:[%s4801_s0 + $0x60] sm:$0xff] }
 0x412   :  { %v578_v39 = vpop.f32.mrb[14].mxu0  ;;  %v618_v40 = vpop.f32.mrb[14].mxu1  ;;  %v577_v45 = vadd.f32 %v576_v36, %v3680_v38 }
 0x413   :  { %v621_v41 = vadd.f32 %v575_v35, %v42_v32  ;;  %v579_v42 = vpop.f32.mrb[15].mxu0  ;;  %v2834_v43 = vpop.f32.mrb[15].mxu1 }
 0x414   :  { %v622_v47 = vadd.f32 %v577_v45, %v43_v46 }
 0x415   :  { %v2507_v44 = vmul.f32 -1.442695, %v621_v41 }
 0x416   :  { %v2508_v48 = vmul.f32 -1.442695, %v622_v47 }
 0x417   :  { %3256 = vpow2.f32 %v2507_v44 }
 0x418   :  { %3258 = vpow2.f32 %v2508_v48  ;;  %v46_v48 = vld [vmem:[%s4801_s0 + $0x68] sm:$0xff] }
 0x421   :  { %v3257_v49 = vpop.eup %3256 }
 0x422   :  { %v629_v50 = vadd.f32 1.0, %v3257_v49  ;;  %v3259_v53 = vpop.eup %3258 }
 0x423   :  { %v630_v59 = vadd.f32 1.0, %v3259_v53 }
 0x424   :  { %3260 = vrcp.f32 %v629_v50 }
 0x42e   :  { %v3261_v55 = vpop.eup %3260 }
 0x42f   :  { %v635_v57 = vmul.f32 %v3261_v55, %v616_v54 }
 0x431   :  { %v636_v58 = vadd.f32 %v635_v57, %v44_v56 }
 0x433   :  { %3262 = vtanh.f32 %v636_v58  ;;  %v47_v58 = vld [vmem:[%s4801_s0 + $0x70] sm:$0xff] }
 0x434   :  { %3264 = vrcp.f32 %v630_v59 }
 0x43d   :  { %v3263_v60 = vpop.eup %3262 }
 0x43e   :  { %v638_v61 = vsub.f32 %v3799_v27, %v3263_v60  ;;  %v3265_v62 = vpop.eup %3264 }
 0x440   :  { %v639_v29 = vmul.f32 %v3265_v62, %v638_v61 }
 0x442   :  { %v3851_v32 = vadd.f32 %v3263_v60, %v639_v29 }
 0x444   :  { %v641_v33 = vpack.c.bf16 %v3851_v32, %v3851_v32 }
 0x446   :  { %675 = vmatmul.mubr.bf16.vlgmr.msra.gmra.mrb[16].mxu0 %v641_v33  ;;  %2852 = vmatmul.mubr.bf16.vlgmr.msra.gmra.mrb[16].mxu1 %v641_v33 }
 0x447   :  { %745 = vmatpush1.bf16.msra.mxu0 %v3481_v3  ;;  %2856 = vmatpush3.bf16.msra.mxu1 %v3518_v9 }
 0x448   :  { %746 = vmatprep.subr.bf16.mxu0 %v3489_v4  ;;  %2857 = vmatprep.subr.bf16.mxu1 %v4811_v1 }
 0x449   :  { %776 = vmatprep.mubr.bf16.mxu0 %v4809_v2  ;;  %2871 = vmatprep.mubr.msk.bf16.mxu1 %vm3420_vm0, %v4811_v1 }
 0x44b   :  { %747 = vmatpush1.bf16.msra.mxu0 %v3495_v5  ;;  %2858 = vmatpush3.bf16.msra.mxu1 %v3536_v12 }
 0x44c   :  { %748 = vmatprep.subr.bf16.mxu0 %v3501_v6  ;;  %2859 = vmatprep.subr.bf16.mxu1 %v4811_v1 }
 0x44f   :  { %749 = vmatpush1.bf16.msra.mxu0 %v3507_v7  ;;  %2860 = vmatpush3.bf16.msra.mxu1 %v3555_v15 }
 0x450   :  { %750 = vmatprep.subr.bf16.mxu0 %v3513_v8  ;;  %2861 = vmatprep.subr.bf16.mxu1 %v4811_v1 }
 0x453   :  { %751 = vmatpush1.bf16.msra.mxu0 %v3524_v10  ;;  %2862 = vmatpush3.bf16.msra.mxu1 %v3574_v18 }
 0x454   :  { %752 = vmatprep.subr.bf16.mxu0 %v3529_v11  ;;  %2863 = vmatprep.subr.bf16.mxu1 %v4811_v1 }
 0x457   :  { %753 = vmatpush1.bf16.msra.mxu0 %v3542_v13  ;;  %2864 = vmatpush3.bf16.msra.mxu1 %v3593_v21 }
 0x458   :  { %754 = vmatprep.subr.bf16.mxu0 %v3548_v14  ;;  %2865 = vmatprep.subr.bf16.mxu1 %v4811_v1 }
 0x45b   :  { %755 = vmatpush1.bf16.msra.mxu0 %v3562_v16  ;;  %2866 = vmatpush3.bf16.msra.mxu1 %v3607_v23 }
 0x45c   :  { %756 = vmatprep.subr.bf16.mxu0 %v3568_v17  ;;  %2867 = vmatprep.subr.bf16.mxu1 %v4811_v1 }
 0x45f   :  { %757 = vmatpush1.bf16.msra.mxu0 %v3581_v19  ;;  %2868 = vmatpush3.bf16.msra.mxu1 %v3615_v24 }
 0x460   :  { %758 = vmatprep.subr.bf16.mxu0 %v3587_v20  ;;  %2869 = vmatprep.subr.bf16.mxu1 %v4811_v1 }
 0x463   :  { %759 = vmatpush1.bf16.msra.mxu0 %v3600_v22  ;;  %2870 = vmatpush3.bf16.msra.mxu1 %v3626_v25 }
 0x464   :  { %846 = vmatprep.subr.bf16.mxu0 %v3474_v0  ;;  %2875 = vmatprep.subr.bf16.mxu1 %v4811_v1 }
 0x519   :  { %v676_v35 = vpop.f32.mrb[16].mxu0  ;;  %v717_v36 = vpop.f32.mrb[16].mxu1 }
 0x51a   :  { %v677_v37 = vadd.f32 %v676_v35, %v3671_v30  ;;  %v678_v39 = vpop.f32.mrb[17].mxu0  ;;  %v2853_v40 = vpop.f32.mrb[17].mxu1  ;;  %v718_v56 = vadd.f32 %v717_v36, %v3689_v52 }
 0x51b   :  { %v680_v41 = vpop.f32.mrb[18].mxu0  ;;  %v720_v42 = vpop.f32.mrb[18].mxu1  ;;  %v679_v47 = vadd.f32 %v678_v39, %v3680_v38 }
 0x51c   :  { %v723_v43 = vadd.f32 %v677_v37, %v45_v34  ;;  %v681_v44 = vpop.f32.mrb[19].mxu0  ;;  %v2854_v45 = vpop.f32.mrb[19].mxu1  ;;  %v49_v42 = vld [vmem:[%s4801_s0 + $0x80] sm:$0xff] }
 0x51d   :  { %v724_v49 = vadd.f32 %v679_v47, %v46_v48 }
 0x51e   :  { %v2509_v46 = vmul.f32 -1.442695, %v723_v43 }
 0x51f   :  { %v2510_v50 = vmul.f32 -1.442695, %v724_v49 }
 0x520   :  { %3266 = vpow2.f32 %v2509_v46 }
 0x521   :  { %3268 = vpow2.f32 %v2510_v50  ;;  %v50_v50 = vld [vmem:[%s4801_s0 + $0x88] sm:$0xff] }
 0x52a   :  { %v3267_v53 = vpop.eup %3266 }
 0x52b   :  { %v731_v54 = vadd.f32 1.0, %v3267_v53  ;;  %v3269_v55 = vpop.eup %3268 }
 0x52c   :  { %v732_v61 = vadd.f32 1.0, %v3269_v55 }
 0x52d   :  { %3270 = vrcp.f32 %v731_v54 }
 0x537   :  { %v3271_v57 = vpop.eup %3270 }
 0x538   :  { %v737_v59 = vmul.f32 %v3271_v57, %v718_v56 }
 0x53a   :  { %v738_v60 = vadd.f32 %v737_v59, %v47_v58 }
 0x53c   :  { %3272 = vtanh.f32 %v738_v60 }
 0x53d   :  { %3274 = vrcp.f32 %v732_v61 }
 0x546   :  { %v3273_v62 = vpop.eup %3272 }
 0x547   :  { %v740_v29 = vsub.f32 %v3851_v32, %v3273_v62  ;;  %v3275_v33 = vpop.eup %3274 }
 0x549   :  { %v741_v34 = vmul.f32 %v3275_v33, %v740_v29  ;;  %v3387_v29 = vld [vmem:[%s4799_s1 + $0x1c] ss:$12 sps:$4 sm:$0xff]   ;;  %v3388_v33 = vld [vmem:[%s4799_s1 + $0x18] ss:$12 sps:$4 sm:$0xff]  }
 0x54b   :  { %v3903_v35 = vadd.f32 %v3273_v62, %v741_v34  ;;  %v3386_v62 = vld [vmem:[%s4799_s1] ss:$12 sps:$4 sm:$0xff]   ;;  %v3390_v34 = vld [vmem:[%s4799_s1 + $0x30] ss:$12 sps:$4 sm:$0xff]  }
 0x54d   :  { %v743_v36 = vpack.c.bf16 %v3903_v35, %v3903_v35 }
 0x54f   :  { %777 = vmatmul.mubr.bf16.vlgmr.msra.gmra.mrb[20].mxu0 %v743_v36  ;;  %2872 = vmatmul.mubr.bf16.vlgmr.msra.gmra.mrb[20].mxu1 %v743_v36  ;;  %v3391_v36 = vld [vmem:[%s4799_s1 + $0x4c] ss:$12 sps:$4 sm:$0xff]  }
 0x550   :  { %847 = vmatpush1.bf16.msra.mxu0 %v3481_v3  ;;  %2876 = vmatpush3.bf16.msra.mxu1 %v3518_v9  ;;  %v48_v3 = vld [vmem:[%s4801_s0 + $0x78] sm:$0xff] }
 0x551   :  { %848 = vmatprep.subr.bf16.mxu0 %v3489_v4  ;;  %2877 = vmatprep.subr.bf16.mxu1 %v4811_v1 }
 0x552   :  { %878 = vmatprep.mubr.bf16.mxu0 %v4809_v2  ;;  %2891 = vmatprep.mubr.msk.bf16.mxu1 %vm3420_vm0, %v4811_v1 }
 0x554   :  { %849 = vmatpush1.bf16.msra.mxu0 %v3495_v5  ;;  %2878 = vmatpush3.bf16.msra.mxu1 %v3536_v12 }
 0x555   :  { %850 = vmatprep.subr.bf16.mxu0 %v3501_v6  ;;  %2879 = vmatprep.subr.bf16.mxu1 %v4811_v1 }
 0x558   :  { %851 = vmatpush1.bf16.msra.mxu0 %v3507_v7  ;;  %2880 = vmatpush3.bf16.msra.mxu1 %v3555_v15 }
 0x559   :  { %852 = vmatprep.subr.bf16.mxu0 %v3513_v8  ;;  %2881 = vmatprep.subr.bf16.mxu1 %v4811_v1 }
 0x55c   :  { %853 = vmatpush1.bf16.msra.mxu0 %v3524_v10  ;;  %2882 = vmatpush3.bf16.msra.mxu1 %v3574_v18 }
 0x55d   :  { %854 = vmatprep.subr.bf16.mxu0 %v3529_v11  ;;  %2883 = vmatprep.subr.bf16.mxu1 %v4811_v1 }
 0x560   :  { %855 = vmatpush1.bf16.msra.mxu0 %v3542_v13  ;;  %2884 = vmatpush3.bf16.msra.mxu1 %v3593_v21 }
 0x561   :  { %856 = vmatprep.subr.bf16.mxu0 %v3548_v14  ;;  %2885 = vmatprep.subr.bf16.mxu1 %v4811_v1 }
 0x564   :  { %857 = vmatpush1.bf16.msra.mxu0 %v3562_v16  ;;  %2886 = vmatpush3.bf16.msra.mxu1 %v3607_v23 }
 0x565   :  { %858 = vmatprep.subr.bf16.mxu0 %v3568_v17  ;;  %2887 = vmatprep.subr.bf16.mxu1 %v4811_v1 }
 0x568   :  { %859 = vmatpush1.bf16.msra.mxu0 %v3581_v19  ;;  %2888 = vmatpush3.bf16.msra.mxu1 %v3615_v24 }
 0x569   :  { %860 = vmatprep.subr.bf16.mxu0 %v3587_v20  ;;  %2889 = vmatprep.subr.bf16.mxu1 %v4811_v1 }
 0x56c   :  { %861 = vmatpush1.bf16.msra.mxu0 %v3600_v22  ;;  %2890 = vmatpush3.bf16.msra.mxu1 %v3626_v25 }
 0x56d   :  { %948 = vmatprep.subr.bf16.mxu0 %v3474_v0  ;;  %2895 = vmatprep.subr.bf16.mxu1 %v4811_v1 }
 0x622   :  { %v778_v4 = vpop.f32.mrb[20].mxu0  ;;  %v819_v5 = vpop.f32.mrb[20].mxu1 }
 0x623   :  { %v779_v6 = vadd.f32 %v778_v4, %v3671_v30  ;;  %v780_v7 = vpop.f32.mrb[21].mxu0  ;;  %v2873_v8 = vpop.f32.mrb[21].mxu1  ;;  %v820_v48 = vadd.f32 %v819_v5, %v3689_v52 }
 0x624   :  { %v782_v10 = vpop.f32.mrb[22].mxu0  ;;  %v822_v11 = vpop.f32.mrb[22].mxu1  ;;  %v781_v0 = vadd.f32 %v780_v7, %v3680_v38 }
 0x625   :  { %v825_v37 = vadd.f32 %v779_v6, %v48_v3  ;;  %v783_v39 = vpop.f32.mrb[23].mxu0  ;;  %v2874_v40 = vpop.f32.mrb[23].mxu1  ;;  %v3393_v3 = vld [vmem:[%s4799_s1 + $0x64] ss:$12 sps:$4 sm:$0xff]   ;;  %v52_v6 = vld [vmem:[%s4801_s0 + $0x98] sm:$0xff] }
 0x626   :  { %v826_v43 = vadd.f32 %v781_v0, %v49_v42 }
 0x627   :  { %v2511_v41 = vmul.f32 -1.442695, %v825_v37 }
 0x628   :  { %v2512_v44 = vmul.f32 -1.442695, %v826_v43 }
 0x629   :  { %3276 = vpow2.f32 %v2511_v41  ;;  %v53_v41 = vld [vmem:[%s4801_s0 + $0xa0] sm:$0xff] }
 0x62a   :  { %3278 = vpow2.f32 %v2512_v44 }
 0x633   :  { %v3277_v45 = vpop.eup %3276 }
 0x634   :  { %v833_v46 = vadd.f32 1.0, %v3277_v45  ;;  %v3279_v47 = vpop.eup %3278 }
 0x635   :  { %v834_v55 = vadd.f32 1.0, %v3279_v47 }
 0x636   :  { %3280 = vrcp.f32 %v833_v46 }
 0x640   :  { %v3281_v49 = vpop.eup %3280 }
 0x641   :  { %v839_v53 = vmul.f32 %v3281_v49, %v820_v48  ;;  %v3154_v49 = vld [vmem:[%s4802_s3] ss:$12 sps:$4 sm:$0xff]  }
 0x643   :  { %v840_v54 = vadd.f32 %v839_v53, %v50_v50  ;;  %v3160_v53 = vld [vmem:[%s4802_s3 + $0x1c] ss:$12 sps:$4 sm:$0xff]  }
 0x645   :  { %3282 = vtanh.f32 %v840_v54  ;;  %v3161_v54 = vld [vmem:[%s4802_s3 + $0x20] ss:$12 sps:$4 sm:$0xff]  }
 0x646   :  { %3284 = vrcp.f32 %v834_v55  ;;  %v1081_v55 = vpack.c.bf16 %v3747_v63, %v3695_v26  ;;  %v3162_v26 = vld [vmem:[%s4802_s3 + $0x30] ss:$12 sps:$4 sm:$0xff]   ;;  %v3168_v63 = vld [vmem:[%s4802_s3 + $0x4c] ss:$12 sps:$4 sm:$0xff]  }
 0x64f   :  { %v3283_v56 = vpop.eup %3282 }
 0x650   :  { %v842_v57 = vsub.f32 %v3903_v35, %v3283_v56  ;;  %v3285_v58 = vpop.eup %3284 }
 0x652   :  { %v843_v59 = vmul.f32 %v3285_v58, %v842_v57  ;;  %v3164_v57 = vld [vmem:[%s4802_s3 + $0x34] ss:$12 sps:$4 sm:$0xff]   ;;  %v3165_v58 = vld [vmem:[%s4802_s3 + $0x38] ss:$12 sps:$4 sm:$0xff]  }
 0x654   :  { %v3955_v60 = vadd.f32 %v3283_v56, %v843_v59  ;;  %v3158_v56 = vld [vmem:[%s4802_s3 + $0x18] ss:$12 sps:$4 sm:$0xff]   ;;  %v3169_v59 = vld [vmem:[%s4802_s3 + $0x50] ss:$12 sps:$4 sm:$0xff]  }
 0x656   :  { %v845_v61 = vpack.c.bf16 %v3955_v60, %v3955_v60 }
 0x658   :  { %879 = vmatmul.mubr.bf16.vlgmr.msra.gmra.mrb[24].mxu0 %v845_v61  ;;  %2892 = vmatmul.mubr.bf16.vlgmr.msra.gmra.mrb[24].mxu1 %v845_v61  ;;  %v3166_v61 = vld [vmem:[%s4802_s3 + $0x48] ss:$12 sps:$4 sm:$0xff]  }
 0x659   :  { %949 = vmatpush1.bf16.msra.mxu0 %v3386_v62  ;;  %2896 = vmatpush3.bf16.msra.mxu1 %v3518_v9  ;;  %v3389_v9 = vld [vmem:[%s4799_s1 + $0x34] ss:$12 sps:$4 sm:$0xff]   ;;  %v3172_v62 = vld [vmem:[%s4802_s3 + $0x64] ss:$12 sps:$4 sm:$0xff]  }
 0x65a   :  { %950 = vmatprep.subr.bf16.mxu0 %v3387_v29  ;;  %2897 = vmatprep.subr.bf16.mxu1 %v4811_v1  ;;  %v3173_v29 = vld [vmem:[%s4802_s3 + $0x68] ss:$12 sps:$4 sm:$0xff]  }
 0x65b   :  { %980 = vmatprep.mubr.bf16.mxu0 %v4809_v2  ;;  %2911 = vmatprep.mubr.msk.bf16.mxu1 %vm3420_vm0, %v4811_v1 }
 0x65d   :  { %951 = vmatpush1.bf16.msra.mxu0 %v3388_v33  ;;  %2898 = vmatpush3.bf16.msra.mxu1 %v3536_v12  ;;  %v3392_v12 = vld [vmem:[%s4799_s1 + $0x48] ss:$12 sps:$4 sm:$0xff]   ;;  %v3170_v33 = vld [vmem:[%s4802_s3 + $0x60] ss:$12 sps:$4 sm:$0xff]  }
 0x65e   :  { %952 = vmatprep.subr.bf16.mxu0 %v3389_v9  ;;  %2899 = vmatprep.subr.bf16.mxu1 %v4811_v1  ;;  %v3176_v9 = vld [vmem:[%s4802_s3 + $0x7c] ss:$12 sps:$4 sm:$0xff]  }
 0x661   :  { %953 = vmatpush1.bf16.msra.mxu0 %v3390_v34  ;;  %2900 = vmatpush3.bf16.msra.mxu1 %v3555_v15  ;;  %v51_v15 = vld [vmem:[%s4801_s0 + $0x90] sm:$0xff]  ;;  %v3177_v34 = vld [vmem:[%s4802_s3 + $0x80] ss:$12 sps:$4 sm:$0xff]  }
 0x662   :  { %954 = vmatprep.subr.bf16.mxu0 %v3391_v36  ;;  %2901 = vmatprep.subr.bf16.mxu1 %v4811_v1  ;;  %v3174_v36 = vld [vmem:[%s4802_s3 + $0x78] ss:$12 sps:$4 sm:$0xff]  }
 0x665   :  { %955 = vmatpush1.bf16.msra.mxu0 %v3392_v12  ;;  %2902 = vmatpush3.bf16.msra.mxu1 %v3574_v18  ;;  %v3180_v12 = vld [vmem:[%s4802_s3 + $0x94] ss:$12 sps:$4 sm:$0xff]  }
 0x666   :  { %956 = vmatprep.subr.bf16.mxu0 %v3393_v3  ;;  %2903 = vmatprep.subr.bf16.mxu1 %v4811_v1  ;;  %v3181_v3 = vld [vmem:[%s4802_s3 + $0x98] ss:$12 sps:$4 sm:$0xff]  }
 0x669   :  { %957 = vmatpush1.bf16.msra.mxu0 %v3542_v13  ;;  %2904 = vmatpush3.bf16.msra.mxu1 %v3593_v21  ;;  %v3156_v13 = vld [vmem:[%s4802_s3 + $0x4] ss:$12 sps:$4 sm:$0xff]  }
 0x66a   :  { %958 = vmatprep.subr.bf16.mxu0 %v3548_v14  ;;  %2905 = vmatprep.subr.bf16.mxu1 %v4811_v1  ;;  %v3157_v14 = vld [vmem:[%s4802_s3 + $0x8] ss:$12 sps:$4 sm:$0xff]  }
 0x66d   :  { %959 = vmatpush1.bf16.msra.mxu0 %v3562_v16  ;;  %2906 = vmatpush3.bf16.msra.mxu1 %v3607_v23 }
 0x66e   :  { %960 = vmatprep.subr.bf16.mxu0 %v3568_v17  ;;  %2907 = vmatprep.subr.bf16.mxu1 %v4811_v1 }
 0x671   :  { %961 = vmatpush1.bf16.msra.mxu0 %v3581_v19  ;;  %2908 = vmatpush3.bf16.msra.mxu1 %v3615_v24 }
 0x672   :  { %962 = vmatprep.subr.bf16.mxu0 %v3587_v20  ;;  %2909 = vmatprep.subr.bf16.mxu1 %v4811_v1 }
 0x675   :  { %963 = vmatpush1.bf16.msra.mxu0 %v3600_v22  ;;  %2910 = vmatpush3.bf16.msra.mxu1 %v3626_v25 }
 0x676   :  { %1230 = vmatprep.subr.bf16.mxu0 %v3156_v13  ;;  %2915 = vmatprep.subr.bf16.mxu1 %v3157_v14  ;;  %v3178_v13 = vld [vmem:[%s4802_s3 + $0x90] ss:$12 sps:$4 sm:$0xff]  }
 0x72b   :  { %v880_v16 = vpop.f32.mrb[24].mxu0  ;;  %v921_v17 = vpop.f32.mrb[24].mxu1 }
 0x72c   :  { %v881_v18 = vadd.f32 %v880_v16, %v3671_v30  ;;  %v882_v19 = vpop.f32.mrb[25].mxu0  ;;  %v2893_v20 = vpop.f32.mrb[25].mxu1  ;;  %v922_v39 = vadd.f32 %v921_v17, %v3689_v52  ;;  %v3182_v16 = vld [vmem:[%s4802_s3 + $0xa8] ss:$12 sps:$4 sm:$0xff]   ;;  %v1082_v17 = vpack.c.bf16 %v3851_v32, %v3799_v27  ;;  %v4111_v27 = vld [vmem:[%s4803_s5 + $0x4] ss:$12 sps:$4 sm:$0xff]  }
 0x72d   :  { %v884_v21 = vpop.f32.mrb[26].mxu0  ;;  %v924_v22 = vpop.f32.mrb[26].mxu1  ;;  %v883_v5 = vadd.f32 %v882_v19, %v3680_v38  ;;  %v4116_v32 = vld [vmem:[%s4803_s5] ss:$12 sps:$4 sm:$0xff]   ;;  %v4140_v20 = vld [vmem:[%s4803_s5 + $0x30] ss:$12 sps:$4 sm:$0xff]  }
 0x72e   :  { %v927_v23 = vadd.f32 %v881_v18, %v51_v15  ;;  %v885_v24 = vpop.f32.mrb[27].mxu0  ;;  %v2894_v25 = vpop.f32.mrb[27].mxu1  ;;  %v3185_v15 = vld [vmem:[%s4802_s3 + $0xb0] ss:$12 sps:$4 sm:$0xff]   ;;  %v1083_v18 = vpack.c.bf16 %v3955_v60, %v3903_v35  ;;  %v4135_v19 = vld [vmem:[%s4803_s5 + $0x34] ss:$12 sps:$4 sm:$0xff]  }
 0x72f   :  { %v928_v7 = vadd.f32 %v883_v5, %v52_v6  ;;  %v4123_v35 = vld [vmem:[%s4803_s5 + $0x1c] ss:$12 sps:$4 sm:$0xff]   ;;  %v4147_v21 = vld [vmem:[%s4803_s5 + $0x4c] ss:$12 sps:$4 sm:$0xff]   ;;  %v4183_v5 = vld [vmem:[%s4803_s5 + $0x94] ss:$12 sps:$4 sm:$0xff]  }
 0x730   :  { %v2513_v4 = vmul.f32 -1.442695, %v927_v23  ;;  %v4152_v22 = vld [vmem:[%s4803_s5 + $0x48] ss:$12 sps:$4 sm:$0xff]   ;;  %v4159_v23 = vld [vmem:[%s4803_s5 + $0x64] ss:$12 sps:$4 sm:$0xff]  }
 0x731   :  { %v2514_v8 = vmul.f32 -1.442695, %v928_v7  ;;  %v4164_v24 = vld [vmem:[%s4803_s5 + $0x60] ss:$12 sps:$4 sm:$0xff]   ;;  %v4171_v25 = vld [vmem:[%s4803_s5 + $0x7c] ss:$12 sps:$4 sm:$0xff]  }
 0x732   :  { %3286 = vpow2.f32 %v2513_v4  ;;  %v4176_v4 = vld [vmem:[%s4803_s5 + $0x78] ss:$12 sps:$4 sm:$0xff]   ;;  %v4189_v6 = vld [vmem:[%s4803_s5 + $0x90] ss:$12 sps:$4 sm:$0xff]   ;;  %v4194_v7 = vld [vmem:[%s4803_s5 + $0x8] ss:$12 sps:$4 sm:$0xff]  }
 0x733   :  { %3288 = vpow2.f32 %v2514_v8  ;;  %v4199_v8 = vld [vmem:[%s4803_s5 + $0xac] ss:$12 sps:$4 sm:$0xff]  }
 0x73c   :  { %v3287_v10 = vpop.eup %3286 }
 0x73d   :  { %v935_v11 = vadd.f32 1.0, %v3287_v10  ;;  %v3289_v37 = vpop.eup %3288  ;;  %v4206_v10 = vld [vmem:[%s4803_s5 + $0xa8] ss:$12 sps:$4 sm:$0xff]  }
 0x73e   :  { %v936_v43 = vadd.f32 1.0, %v3289_v37  ;;  %v4222_v37 = vld [vmem:[%s4803_s5 + $0x38] ss:$12 sps:$4 sm:$0xff]  }
 0x73f   :  { %3290 = vrcp.f32 %v935_v11  ;;  %v4211_v11 = vld [vmem:[%s4803_s5 + $0x20] ss:$12 sps:$4 sm:$0xff]  }
 0x749   :  { %v3291_v40 = vpop.eup %3290 }
 0x74a   :  { %v941_v0 = vmul.f32 %v3291_v40, %v922_v39  ;;  %v4228_v39 = vld [vmem:[%s4803_s5 + $0x50] ss:$12 sps:$4 sm:$0xff]   ;;  %v4235_v40 = vld [vmem:[%s4803_s5 + $0x68] ss:$12 sps:$4 sm:$0xff]  }
 0x74c   :  { %v942_v42 = vadd.f32 %v941_v0, %v53_v41  ;;  %v4242_v41 = vld [vmem:[%s4803_s5 + $0x80] ss:$12 sps:$4 sm:$0xff]   ;;  %v4249_v0 = vld [vmem:[%s4803_s5 + $0x98] ss:$12 sps:$4 sm:$0xff]  }
 0x74e   :  { %3292 = vtanh.f32 %v942_v42  ;;  %v4256_v42 = vld [vmem:[%s4803_s5 + $0xb0] ss:$12 sps:$4 sm:$0xff]  }
 0x74f   :  { %3294 = vrcp.f32 %v936_v43  ;;  %v54_v43 = vld [vmem:[%s4801_s0 + $0xa8] sm:$0xff] }
 0x758   :  { %v3293_v44 = vpop.eup %3292 }
 0x759   :  { %v944_v45 = vsub.f32 %v3955_v60, %v3293_v44  ;;  %v3295_v46 = vpop.eup %3294  ;;  %v4128_v60 = vld [vmem:[%s4803_s5 + $0x18] ss:$12 sps:$4 sm:$0xff]  }
 0x75b   :  { %v945_v47 = vmul.f32 %v3295_v46, %v944_v45 }
 0x75d   :  { %v4027_v48 = vadd.f32 %v3293_v44, %v945_v47 }
 0x75f   :  { %v947_v50 = vpack.c.bf16 %v4027_v48, %v4027_v48 }
 0x761   :  { %981 = vmatmul.mubr.bf16.vlgmr.msra.gmra.mrb[28].mxu0 %v947_v50  ;;  %2912 = vmatmul.mubr.bf16.vlgmr.msra.gmra.mrb[28].mxu1 %v947_v50 }
 0x762   :  { %1231 = vmatpush1.bf16.msra.mxu0 %v3154_v49  ;;  %2916 = vmatpush3.bf16.msra.mxu1 %v3157_v14  ;;  %v3184_v14 = vld [vmem:[%s4802_s3 + $0xac] ss:$12 sps:$4 sm:$0xff]  }
 0x763   :  { %2931 = vmatprep.mubr.bf16.mxu1 %v1081_v55  ;;  %1232 = vmatprep.subr.bf16.mxu0 %v3160_v53 }
 0x764   :  { %2917 = vmatprep.subr.bf16.mxu1 %v3161_v54  ;;  %1262 = vmatprep.mubr.bf16.mxu0 %v4809_v2 }
 0x766   :  { %1233 = vmatpush1.bf16.msra.mxu0 %v3158_v56  ;;  %2918 = vmatpush3.bf16.msra.mxu1 %v3161_v54 }
 0x767   :  { %1234 = vmatprep.subr.bf16.mxu0 %v3164_v57  ;;  %2919 = vmatprep.subr.bf16.mxu1 %v3165_v58 }
 0x76a   :  { %1235 = vmatpush1.bf16.msra.mxu0 %v3162_v26  ;;  %2920 = vmatpush3.bf16.msra.mxu1 %v3165_v58  ;;  %v55_v26 = vld [vmem:[%s4801_s0 + $0xb0] sm:$0xff] }
 0x76b   :  { %1236 = vmatprep.subr.bf16.mxu0 %v3168_v63  ;;  %2921 = vmatprep.subr.bf16.mxu1 %v3169_v59 }
 0x76e   :  { %1237 = vmatpush1.bf16.msra.mxu0 %v3166_v61  ;;  %2922 = vmatpush3.bf16.msra.mxu1 %v3169_v59 }
 0x76f   :  { %1238 = vmatprep.subr.bf16.mxu0 %v3172_v62  ;;  %2923 = vmatprep.subr.bf16.mxu1 %v3173_v29 }
 0x772   :  { %1239 = vmatpush1.bf16.msra.mxu0 %v3170_v33  ;;  %2924 = vmatpush3.bf16.msra.mxu1 %v3173_v29 }
 0x773   :  { %1240 = vmatprep.subr.bf16.mxu0 %v3176_v9  ;;  %2925 = vmatprep.subr.bf16.mxu1 %v3177_v34  ;;  %v56_v9 = vld [vmem:[%s4801_s0 + $0xb8] sm:$0xff] }
 0x776   :  { %1241 = vmatpush1.bf16.msra.mxu0 %v3174_v36  ;;  %2926 = vmatpush3.bf16.msra.mxu1 %v3177_v34 }
 0x777   :  { %1242 = vmatprep.subr.bf16.mxu0 %v3180_v12  ;;  %2927 = vmatprep.subr.bf16.mxu1 %v3181_v3 }
 0x77a   :  { %1243 = vmatpush1.bf16.msra.mxu0 %v3178_v13  ;;  %2928 = vmatpush3.bf16.msra.mxu1 %v3181_v3 }
 0x77b   :  { %1244 = vmatprep.subr.bf16.mxu0 %v3184_v14  ;;  %2929 = vmatprep.subr.bf16.mxu1 %v3185_v15 }
 0x77e   :  { %1245 = vmatpush1.bf16.msra.mxu0 %v3182_v16  ;;  %2930 = vmatpush3.bf16.msra.mxu1 %v3185_v15 }
 0x77f   :  { %2939 = vmatprep.subr.bf16.mxu1 %v4811_v1  ;;  %1545 = vmatprep.subr.bf16.mxu0 %v4111_v27 }
 0x781   :  { %1263 = vmatmul.mubr.bf16.vlgmr.msra.gmra.mrb[32].mxu0 %v1081_v55  ;;  %2932 = vmatmul.mubr.bf16.vlgmr.msra.gmra.mrb[32].mxu1 %v1082_v17 }
 0x782   :  { %2935 = vmatprep.mubr.bf16.mxu1 %v1083_v18  ;;  %1272 = vmatprep.mubr.bf16.mxu0 %v4809_v2 }
 0x783   :  { %1546 = vmatpush1.bf16.msra.mxu0 %v4116_v32  ;;  %2940 = vmatpush3.bf16.msra.mxu1 %v4194_v7 }
 0x784   :  { %1547 = vmatprep.subr.bf16.mxu0 %v4123_v35  ;;  %2941 = vmatprep.subr.bf16.mxu1 %v4811_v1 }
 0x787   :  { %1548 = vmatpush1.bf16.msra.mxu0 %v4128_v60  ;;  %2942 = vmatpush3.bf16.msra.mxu1 %v4211_v11 }
 0x788   :  { %1549 = vmatprep.subr.bf16.mxu0 %v4135_v19  ;;  %2943 = vmatprep.subr.bf16.mxu1 %v4811_v1 }
 0x789   :  { %1273 = vmatmul.mubr.bf16.gmra.mrb[36].mxu0 %v1082_v17 }
 0x78a   :  { %1282 = vmatprep.mubr.bf16.mxu0 %v4809_v2 }
 0x78b   :  { %1550 = vmatpush1.bf16.msra.mxu0 %v4140_v20  ;;  %2944 = vmatpush3.bf16.msra.mxu1 %v4222_v37 }
 0x78c   :  { %1551 = vmatprep.subr.bf16.mxu0 %v4147_v21  ;;  %2945 = vmatprep.subr.bf16.mxu1 %v4811_v1 }
 0x78f   :  { %1552 = vmatpush1.bf16.msra.mxu0 %v4152_v22  ;;  %2946 = vmatpush3.bf16.msra.mxu1 %v4228_v39 }
 0x790   :  { %1553 = vmatprep.subr.bf16.mxu0 %v4159_v23  ;;  %2947 = vmatprep.subr.bf16.mxu1 %v4811_v1 }
 0x791   :  { %1283 = vmatmul.mubr.bf16.gmra.mrb[40].mxu0 %v1083_v18 }
 0x792   :  { %1292 = vmatprep.mubr.bf16.mxu0 %v4809_v2 }
 0x793   :  { %1554 = vmatpush1.bf16.msra.mxu0 %v4164_v24  ;;  %2948 = vmatpush3.bf16.msra.mxu1 %v4235_v40 }
 0x794   :  { %1555 = vmatprep.subr.bf16.mxu0 %v4171_v25  ;;  %2949 = vmatprep.subr.bf16.mxu1 %v4811_v1 }
 0x797   :  { %1556 = vmatpush1.bf16.msra.mxu0 %v4176_v4  ;;  %2950 = vmatpush3.bf16.msra.mxu1 %v4242_v41 }
 0x798   :  { %1557 = vmatprep.subr.bf16.mxu0 %v4183_v5  ;;  %2951 = vmatprep.subr.bf16.mxu1 %v4811_v1 }
 0x79b   :  { %1558 = vmatpush1.bf16.msra.mxu0 %v4189_v6  ;;  %2952 = vmatpush3.bf16.msra.mxu1 %v4249_v0 }
 0x79c   :  { %1559 = vmatprep.subr.bf16.mxu0 %v4199_v8  ;;  %2953 = vmatprep.subr.bf16.mxu1 %v4811_v1 }
 0x79f   :  { %1560 = vmatpush1.bf16.msra.mxu0 %v4206_v10  ;;  %2954 = vmatpush3.bf16.msra.mxu1 %v4256_v42 }
 0x7a0   :  { %1647 = vmatprep.subr.bf16.mxu0 %v4111_v27  ;;  %2959 = vmatprep.subr.bf16.mxu1 %v4811_v1 }
 0x834   :  { %v982_v44 = vpop.f32.mrb[28].mxu0  ;;  %v1023_v45 = vpop.f32.mrb[28].mxu1 }
 0x835   :  { %v983_v46 = vadd.f32 %v982_v44, %v3671_v30  ;;  %v984_v47 = vpop.f32.mrb[29].mxu0  ;;  %v2913_v49 = vpop.f32.mrb[29].mxu1  ;;  %v1024_v29 = vadd.f32 %v1023_v45, %v3689_v52 }
 0x836   :  { %v986_v50 = vpop.f32.mrb[30].mxu0  ;;  %v1026_v53 = vpop.f32.mrb[30].mxu1  ;;  %v985_v58 = vadd.f32 %v984_v47, %v3680_v38 }
 0x837   :  { %v1029_v54 = vadd.f32 %v983_v46, %v54_v43  ;;  %v987_v55 = vpop.f32.mrb[31].mxu0  ;;  %v2914_v56 = vpop.f32.mrb[31].mxu1 }
 0x838   :  { %v1030_v63 = vadd.f32 %v985_v58, %v55_v26 }
 0x839   :  { %v2515_v57 = vmul.f32 -1.442695, %v1029_v54 }
 0x83a   :  { %v2516_v59 = vmul.f32 -1.442695, %v1030_v63 }
 0x83b   :  { %3296 = vpow2.f32 %v2515_v57 }
 0x83c   :  { %3298 = vpow2.f32 %v2516_v59 }
 0x845   :  { %v3297_v61 = vpop.eup %3296 }
 0x846   :  { %v1037_v62 = vadd.f32 1.0, %v3297_v61  ;;  %v3299_v30 = vpop.eup %3298  ;;  %v1085_v61 = vld [vmem:[%s4804_s4] sm:$0x7] }
 0x847   :  { %v1038_v3 = vadd.f32 1.0, %v3299_v30 }
 0x848   :  { %3300 = vrcp.f32 %v1037_v62 }
 0x852   :  { %v3301_v33 = vpop.eup %3300 }
 0x853   :  { %v1043_v34 = vmul.f32 %v3301_v33, %v1024_v29  ;;  %v1400_v29 = vld [vmem:[%s4805_s6] sm:$0x7] }
 0x854   :  { %v4273_v38 = vpop.f32.mrb[32].mxu0  ;;  %v4275_v36 = vpop.f32.mrb[32].mxu1 }
 0x855   :  { %v1044_v12 = vadd.f32 %v1043_v34, %v56_v9  ;;  %v4277_v13 = vpop.f32.mrb[33].mxu0  ;;  %v4279_v14 = vpop.f32.mrb[33].mxu1  ;;  %v4370_v34 = vrot.slane %v1085_v61, %v3665_v28 }
 0x856   :  { %v4281_v15 = vpop.f32.mrb[34].mxu0  ;;  %v4283_v16 = vpop.f32.mrb[34].mxu1 }
 0x857   :  { %3302 = vtanh.f32 %v1044_v12  ;;  %v4285_v52 = vpop.f32.mrb[35].mxu0  ;;  %v4287_v17 = vpop.f32.mrb[35].mxu1  ;;  %v4373_v12 = vrot.slane %v1400_v29, %v3665_v28 }
 0x858   :  { %3304 = vrcp.f32 %v1038_v3  ;;  %v4376_v3 = vrot.slane %v1085_v61, %v3673_v31 }
 0x85c   :  { %v4289_v18 = vpop.f32.mrb[36].mxu0 }
 0x85d   :  { %v4291_v43 = vpop.f32.mrb[37].mxu0 }
 0x85e   :  { %v4293_v44 = vpop.f32.mrb[38].mxu0 }
 0x85f   :  { %v4295_v45 = vpop.f32.mrb[39].mxu0 }
 0x861   :  { %v3303_v46 = vpop.eup %3302 }
 0x862   :  { %v1046_v47 = vsub.f32 %v4027_v48, %v3303_v46  ;;  %v3305_v49 = vpop.eup %3304 }
 0x864   :  { %v4298_v50 = vpop.f32.mrb[40].mxu0  ;;  %v1047_v53 = vmul.f32 %v3305_v49, %v1046_v47 }
 0x865   :  { %v4300_v54 = vpop.f32.mrb[41].mxu0 }
 0x866   :  { %v4302_v55 = vpop.f32.mrb[42].mxu0  ;;  %v1048_v56 = vadd.f32 %v3303_v46, %v1047_v53  ;;  %v4379_v46 = vrot.slane %v1400_v29, %v3673_v31  ;;  %v1265_v53 = vadd.f32 %v4273_v38, %v4370_v34 }
 0x867   :  { %v4304_v57 = vpop.f32.mrb[43].mxu0 }
 0x868   :  { %4813 = vst [vmem:[#allocation2_spill] sm:$0xff] %v4304_v57  ;;  %v1084_v58 = vpack.c.bf16 %v1048_v56, %v4027_v48 }
 0x86a   :  { %1293 = vmatmul.mubr.bf16.gmra.mrb[44].mxu0 %v1084_v58  ;;  %2936 = vmatmul.mubr.bf16.gmra.mrb[36].mxu1 %v1084_v58 }
 0x86b   :  { %1577 = vmatprep.mubr.bf16.mxu0 %v4809_v2  ;;  %2955 = vmatprep.mubr.msk.bf16.mxu1 %vm3420_vm0, %v4811_v1 }
 0x872   :  { %1578 = vmatmul.mubr.bf16.vlgmr.msra.gmra.mrb[48].mxu0 %v4809_v2  ;;  %2956 = vmatmul.mubr.bf16.vlgmr.msra.gmra.mrb[40].mxu1 %v4809_v2 }
 0x873   :  { %1648 = vmatpush1.bf16.msra.mxu0 %v4116_v32  ;;  %2960 = vmatpush3.bf16.msra.mxu1 %v4194_v7 }
 0x874   :  { %1649 = vmatprep.subr.bf16.mxu0 %v4123_v35  ;;  %2961 = vmatprep.subr.bf16.mxu1 %v4811_v1 }
 0x875   :  { %1679 = vmatprep.mubr.bf16.mxu0 %v4809_v2  ;;  %2975 = vmatprep.mubr.msk.bf16.mxu1 %vm3420_vm0, %v4811_v1 }
 0x877   :  { %1650 = vmatpush1.bf16.msra.mxu0 %v4128_v60  ;;  %2962 = vmatpush3.bf16.msra.mxu1 %v4211_v11 }
 0x878   :  { %1651 = vmatprep.subr.bf16.mxu0 %v4135_v19  ;;  %2963 = vmatprep.subr.bf16.mxu1 %v4811_v1 }
 0x87b   :  { %1652 = vmatpush1.bf16.msra.mxu0 %v4140_v20  ;;  %2964 = vmatpush3.bf16.msra.mxu1 %v4222_v37 }
 0x87c   :  { %1653 = vmatprep.subr.bf16.mxu0 %v4147_v21  ;;  %2965 = vmatprep.subr.bf16.mxu1 %v4811_v1 }
 0x87f   :  { %1654 = vmatpush1.bf16.msra.mxu0 %v4152_v22  ;;  %2966 = vmatpush3.bf16.msra.mxu1 %v4228_v39 }
 0x880   :  { %1655 = vmatprep.subr.bf16.mxu0 %v4159_v23  ;;  %2967 = vmatprep.subr.bf16.mxu1 %v4811_v1 }
 0x883   :  { %1656 = vmatpush1.bf16.msra.mxu0 %v4164_v24  ;;  %2968 = vmatpush3.bf16.msra.mxu1 %v4235_v40 }
 0x884   :  { %1657 = vmatprep.subr.bf16.mxu0 %v4171_v25  ;;  %2969 = vmatprep.subr.bf16.mxu1 %v4811_v1 }
 0x887   :  { %1658 = vmatpush1.bf16.msra.mxu0 %v4176_v4  ;;  %2970 = vmatpush3.bf16.msra.mxu1 %v4242_v41 }
 0x888   :  { %1659 = vmatprep.subr.bf16.mxu0 %v4183_v5  ;;  %2971 = vmatprep.subr.bf16.mxu1 %v4811_v1 }
 0x88b   :  { %1660 = vmatpush1.bf16.msra.mxu0 %v4189_v6  ;;  %2972 = vmatpush3.bf16.msra.mxu1 %v4249_v0 }
 0x88c   :  { %1661 = vmatprep.subr.bf16.mxu0 %v4199_v8  ;;  %2973 = vmatprep.subr.bf16.mxu1 %v4811_v1 }
 0x88f   :  { %1662 = vmatpush1.bf16.msra.mxu0 %v4206_v10  ;;  %2974 = vmatpush3.bf16.msra.mxu1 %v4256_v42 }
 0x890   :  { %1749 = vmatprep.subr.bf16.mxu0 %v4111_v27  ;;  %2979 = vmatprep.subr.bf16.mxu1 %v4811_v1  ;;  %v1267_v1 = vadd.f32 %v4277_v13, %v4376_v3  ;;  %v4391_v13 = vrot.slane %v1085_v61, %v3686_v51  ;;  %v4822_v61 = vmov 0  }
 0x93d   :  { %v4347_v48 = vpop.f32.mrb[44].mxu0  ;;  %v4349_v26 = vpop.f32.mrb[36].mxu1 }
 0x93e   :  { %4814 = vst [vmem:[#allocation3_spill] sm:$0xff] %v4347_v48  ;;  %4815 = vst [vmem:[#allocation4_spill] sm:$0xff] %v4349_v26  ;;  %v4351_v63 = vpop.f32.mrb[45].mxu0  ;;  %v4353_v59 = vpop.f32.mrb[37].mxu1 }
 0x93f   :  { %4816 = vst [vmem:[#allocation5_spill] sm:$0xff] %v4351_v63  ;;  %v4358_v62 = vpop.f32.mrb[46].mxu0  ;;  %v4360_v30 = vpop.f32.mrb[38].mxu1 }
 0x940   :  { %4817 = vst [vmem:[#allocation6_spill] sm:$0xff] %v4358_v62  ;;  %4818 = vst [vmem:[#allocation7_spill] sm:$0xff] %v4360_v30  ;;  %v4365_v33 = vpop.f32.mrb[47].mxu0  ;;  %v4367_v9 = vpop.f32.mrb[39].mxu1 }
 0x941   :  { %4819 = vst [vmem:[#allocation8_spill] sm:$0xff] %v4365_v33  ;;  %4820 = vst [vmem:[#allocation9_spill] sm:$0xff] %v4367_v9 }
 0x945   :  { %v1579_v47 = vpop.f32.mrb[48].mxu0  ;;  %v1620_v49 = vpop.f32.mrb[40].mxu1 }
 0x946   :  { %v1580_v56 = vadd.f32 %v1579_v47, %v4373_v12  ;;  %v1581_v58 = vpop.f32.mrb[49].mxu0  ;;  %v2957_v2 = vpop.f32.mrb[41].mxu1 }
 0x947   :  { %v1582_v28 = vadd.f32 %v1581_v58, %v4379_v46  ;;  %v1583_v30 = vpop.f32.mrb[50].mxu0  ;;  %v1623_v33 = vpop.f32.mrb[42].mxu1  ;;  %v4388_v2 = vrot.slane %v1400_v29, %v3686_v51  ;;  %v1269_v58 = vadd.f32 %v4281_v15, %v4370_v34 }
 0x948   :  { %v1626_v62 = vadd.f32 %v1580_v56, %v1265_v53  ;;  %v1584_v26 = vpop.f32.mrb[51].mxu0  ;;  %v2958_v31 = vpop.f32.mrb[43].mxu1 }
 0x949   :  { %v1627_v63 = vadd.f32 %v1582_v28, %v1267_v1  ;;  %v1621_v30 = vadd.f32 %v1620_v49, %v4388_v2  ;;  %v1338_v1 = vadd.f32 %v4279_v14, %v4391_v13  ;;  %v4821_v14 = vmov 0.0  }
 0x94a   :  { %v2565_v48 = vmul.f32 -1.442695, %v1626_v62 }
 0x94b   :  { %v2566_v9 = vmul.f32 -1.442695, %v1627_v63 }
 0x94c   :  { %3306 = vpow2.f32 %v2565_v48 }
 0x94d   :  { %3308 = vpow2.f32 %v2566_v9 }
 0x956   :  { %v3307_v57 = vpop.eup %3306 }
 0x957   :  { %v1634_v38 = vadd.f32 1.0, %v3307_v57  ;;  %v3309_v33 = vpop.eup %3308 }
 0x958   :  { %v1635_v48 = vadd.f32 1.0, %v3309_v33 }
 0x959   :  { %3310 = vrcp.f32 %v1634_v38 }
 0x963   :  { %v3311_v47 = vpop.eup %3310 }
 0x964   :  { %v1640_v26 = vmul.f32 %v3311_v47, %v1621_v30  ;;  %v1271_v30 = vadd.f32 %v4285_v52, %v4376_v3  ;;  %v1341_v52 = vadd.f32 %v4287_v17, %v4391_v13 }
 0x966   :  { %v1641_v63 = vadd.f32 %v1640_v26, %v1338_v1 }
 0x968   :  { %3312 = vtanh.f32 %v1641_v63 }
 0x969   :  { %3314 = vrcp.f32 %v1635_v48 }
 0x972   :  { %v3313_v57 = vpop.eup %3312 }
 0x973   :  { %v1643_v62 = vsub.f32 0.0, %v3313_v57  ;;  %v3315_v9 = vpop.eup %3314 }
 0x975   :  { %v1644_v29 = vmul.f32 %v3315_v9, %v1643_v62 }
 0x977   :  { %v4396_v53 = vadd.f32 %v3313_v57, %v1644_v29 }
 0x979   :  { %v1646_v51 = vpack.c.bf16 %v4396_v53, %v4396_v53 }
 0x97b   :  { %1680 = vmatmul.mubr.bf16.vlgmr.msra.gmra.mrb[52].mxu0 %v1646_v51  ;;  %2976 = vmatmul.mubr.bf16.vlgmr.msra.gmra.mrb[44].mxu1 %v1646_v51 }
 0x97c   :  { %1750 = vmatpush1.bf16.msra.mxu0 %v4116_v32  ;;  %2980 = vmatpush3.bf16.msra.mxu1 %v4194_v7 }
 0x97d   :  { %1751 = vmatprep.subr.bf16.mxu0 %v4123_v35  ;;  %2981 = vmatprep.subr.bf16.mxu1 %v4821_v14 }
 0x97e   :  { %1781 = vmatprep.mubr.bf16.mxu0 %v4822_v61  ;;  %2995 = vmatprep.mubr.msk.bf16.mxu1 %vm3420_vm0, %v4821_v14 }
 0x980   :  { %1752 = vmatpush1.bf16.msra.mxu0 %v4128_v60  ;;  %2982 = vmatpush3.bf16.msra.mxu1 %v4211_v11 }
 0x981   :  { %1753 = vmatprep.subr.bf16.mxu0 %v4135_v19  ;;  %2983 = vmatprep.subr.bf16.mxu1 %v4821_v14 }
 0x984   :  { %1754 = vmatpush1.bf16.msra.mxu0 %v4140_v20  ;;  %2984 = vmatpush3.bf16.msra.mxu1 %v4222_v37 }
 0x985   :  { %1755 = vmatprep.subr.bf16.mxu0 %v4147_v21  ;;  %2985 = vmatprep.subr.bf16.mxu1 %v4821_v14 }
 0x988   :  { %1756 = vmatpush1.bf16.msra.mxu0 %v4152_v22  ;;  %2986 = vmatpush3.bf16.msra.mxu1 %v4228_v39 }
 0x989   :  { %1757 = vmatprep.subr.bf16.mxu0 %v4159_v23  ;;  %2987 = vmatprep.subr.bf16.mxu1 %v4821_v14 }
 0x98c   :  { %1758 = vmatpush1.bf16.msra.mxu0 %v4164_v24  ;;  %2988 = vmatpush3.bf16.msra.mxu1 %v4235_v40 }
 0x98d   :  { %1759 = vmatprep.subr.bf16.mxu0 %v4171_v25  ;;  %2989 = vmatprep.subr.bf16.mxu1 %v4821_v14 }
 0x990   :  { %1760 = vmatpush1.bf16.msra.mxu0 %v4176_v4  ;;  %2990 = vmatpush3.bf16.msra.mxu1 %v4242_v41 }
 0x991   :  { %1761 = vmatprep.subr.bf16.mxu0 %v4183_v5  ;;  %2991 = vmatprep.subr.bf16.mxu1 %v4821_v14 }
 0x994   :  { %1762 = vmatpush1.bf16.msra.mxu0 %v4189_v6  ;;  %2992 = vmatpush3.bf16.msra.mxu1 %v4249_v0 }
 0x995   :  { %1763 = vmatprep.subr.bf16.mxu0 %v4199_v8  ;;  %2993 = vmatprep.subr.bf16.mxu1 %v4821_v14 }
 0x998   :  { %1764 = vmatpush1.bf16.msra.mxu0 %v4206_v10  ;;  %2994 = vmatpush3.bf16.msra.mxu1 %v4256_v42 }
 0x999   :  { %1851 = vmatprep.subr.bf16.mxu0 %v4111_v27  ;;  %2999 = vmatprep.subr.bf16.mxu1 %v4821_v14 }
 0xa4e   :  { %v1681_v49 = vpop.f32.mrb[52].mxu0  ;;  %v1722_v56 = vpop.f32.mrb[44].mxu1 }
 0xa4f   :  { %v1682_v28 = vadd.f32 %v1681_v49, %v4373_v12  ;;  %v1683_v31 = vpop.f32.mrb[53].mxu0  ;;  %v2977_v38 = vpop.f32.mrb[45].mxu1  ;;  %v1723_v49 = vadd.f32 %v1722_v56, %v4388_v2  ;;  %v1275_v56 = vadd.f32 %v4289_v18, %v4370_v34 }
 0xa50   :  { %v1684_v33 = vadd.f32 %v1683_v31, %v4379_v46  ;;  %v1685_v47 = vpop.f32.mrb[54].mxu0  ;;  %v1725_v1 = vpop.f32.mrb[46].mxu1 }
 0xa51   :  { %v1728_v26 = vadd.f32 %v1682_v28, %v1269_v58  ;;  %v1686_v48 = vpop.f32.mrb[55].mxu0  ;;  %v2978_v63 = vpop.f32.mrb[47].mxu1 }
 0xa52   :  { %v1729_v57 = vadd.f32 %v1684_v33, %v1271_v30 }
 0xa53   :  { %v2567_v62 = vmul.f32 -1.442695, %v1728_v26 }
 0xa54   :  { %v2568_v9 = vmul.f32 -1.442695, %v1729_v57 }
 0xa55   :  { %3316 = vpow2.f32 %v2567_v62 }
 0xa56   :  { %3318 = vpow2.f32 %v2568_v9  ;;  %v1277_v9 = vadd.f32 %v4291_v43, %v4376_v3  ;;  %v1346_v43 = vadd.f32 %v4275_v36, %v4391_v13 }
 0xa5f   :  { %v3317_v29 = vpop.eup %3316 }
 0xa60   :  { %v1736_v15 = vadd.f32 1.0, %v3317_v29  ;;  %v3319_v51 = vpop.eup %3318 }
 0xa61   :  { %v1737_v58 = vadd.f32 1.0, %v3319_v51 }
 0xa62   :  { %3320 = vrcp.f32 %v1736_v15 }
 0xa6c   :  { %v3321_v38 = vpop.eup %3320 }
 0xa6d   :  { %v1742_v31 = vmul.f32 %v3321_v38, %v1723_v49 }
 0xa6f   :  { %v1743_v47 = vadd.f32 %v1742_v31, %v1341_v52 }
 0xa71   :  { %3322 = vtanh.f32 %v1743_v47 }
 0xa72   :  { %3324 = vrcp.f32 %v1737_v58 }
 0xa7b   :  { %v3323_v28 = vpop.eup %3322 }
 0xa7c   :  { %v1745_v30 = vsub.f32 %v4396_v53, %v3323_v28  ;;  %v3325_v33 = vpop.eup %3324 }
 0xa7e   :  { %v1746_v1 = vmul.f32 %v3325_v33, %v1745_v30 }
 0xa80   :  { %v4445_v26 = vadd.f32 %v3323_v28, %v1746_v1 }
 0xa82   :  { %v1748_v48 = vpack.c.bf16 %v4445_v26, %v4445_v26 }
 0xa84   :  { %1782 = vmatmul.mubr.bf16.vlgmr.msra.gmra.mrb[56].mxu0 %v1748_v48  ;;  %2996 = vmatmul.mubr.bf16.vlgmr.msra.gmra.mrb[48].mxu1 %v1748_v48 }
 0xa85   :  { %1852 = vmatpush1.bf16.msra.mxu0 %v4116_v32  ;;  %3000 = vmatpush3.bf16.msra.mxu1 %v4194_v7 }
 0xa86   :  { %1853 = vmatprep.subr.bf16.mxu0 %v4123_v35  ;;  %3001 = vmatprep.subr.bf16.mxu1 %v4821_v14 }
 0xa87   :  { %1883 = vmatprep.mubr.bf16.mxu0 %v4822_v61  ;;  %3015 = vmatprep.mubr.msk.bf16.mxu1 %vm3420_vm0, %v4821_v14 }
 0xa89   :  { %1854 = vmatpush1.bf16.msra.mxu0 %v4128_v60  ;;  %3002 = vmatpush3.bf16.msra.mxu1 %v4211_v11 }
 0xa8a   :  { %1855 = vmatprep.subr.bf16.mxu0 %v4135_v19  ;;  %3003 = vmatprep.subr.bf16.mxu1 %v4821_v14 }
 0xa8d   :  { %1856 = vmatpush1.bf16.msra.mxu0 %v4140_v20  ;;  %3004 = vmatpush3.bf16.msra.mxu1 %v4222_v37 }
 0xa8e   :  { %1857 = vmatprep.subr.bf16.mxu0 %v4147_v21  ;;  %3005 = vmatprep.subr.bf16.mxu1 %v4821_v14 }
 0xa91   :  { %1858 = vmatpush1.bf16.msra.mxu0 %v4152_v22  ;;  %3006 = vmatpush3.bf16.msra.mxu1 %v4228_v39 }
 0xa92   :  { %1859 = vmatprep.subr.bf16.mxu0 %v4159_v23  ;;  %3007 = vmatprep.subr.bf16.mxu1 %v4821_v14 }
 0xa95   :  { %1860 = vmatpush1.bf16.msra.mxu0 %v4164_v24  ;;  %3008 = vmatpush3.bf16.msra.mxu1 %v4235_v40 }
 0xa96   :  { %1861 = vmatprep.subr.bf16.mxu0 %v4171_v25  ;;  %3009 = vmatprep.subr.bf16.mxu1 %v4821_v14 }
 0xa99   :  { %1862 = vmatpush1.bf16.msra.mxu0 %v4176_v4  ;;  %3010 = vmatpush3.bf16.msra.mxu1 %v4242_v41 }
 0xa9a   :  { %1863 = vmatprep.subr.bf16.mxu0 %v4183_v5  ;;  %3011 = vmatprep.subr.bf16.mxu1 %v4821_v14 }
 0xa9d   :  { %1864 = vmatpush1.bf16.msra.mxu0 %v4189_v6  ;;  %3012 = vmatpush3.bf16.msra.mxu1 %v4249_v0 }
 0xa9e   :  { %1865 = vmatprep.subr.bf16.mxu0 %v4199_v8  ;;  %3013 = vmatprep.subr.bf16.mxu1 %v4821_v14 }
 0xaa1   :  { %1866 = vmatpush1.bf16.msra.mxu0 %v4206_v10  ;;  %3014 = vmatpush3.bf16.msra.mxu1 %v4256_v42 }
 0xaa2   :  { %1953 = vmatprep.subr.bf16.mxu0 %v4111_v27  ;;  %3019 = vmatprep.subr.bf16.mxu1 %v4821_v14 }
 0xb57   :  { %v1783_v17 = vpop.f32.mrb[56].mxu0  ;;  %v1824_v53 = vpop.f32.mrb[48].mxu1 }
 0xb58   :  { %v1784_v63 = vadd.f32 %v1783_v17, %v4373_v12  ;;  %v1785_v57 = vpop.f32.mrb[57].mxu0  ;;  %v2997_v62 = vpop.f32.mrb[49].mxu1  ;;  %v1825_v33 = vadd.f32 %v1824_v53, %v4388_v2  ;;  %v1279_v53 = vadd.f32 %v4293_v44, %v4370_v34 }
 0xb59   :  { %v1786_v29 = vadd.f32 %v1785_v57, %v4379_v46  ;;  %v1787_v15 = vpop.f32.mrb[58].mxu0  ;;  %v1827_v51 = vpop.f32.mrb[50].mxu1 }
 0xb5a   :  { %v1830_v49 = vadd.f32 %v1784_v63, %v1275_v56  ;;  %v1788_v38 = vpop.f32.mrb[59].mxu0  ;;  %v2998_v52 = vpop.f32.mrb[51].mxu1 }
 0xb5b   :  { %v1831_v31 = vadd.f32 %v1786_v29, %v1277_v9  ;;  %v1281_v52 = vadd.f32 %v4295_v45, %v4376_v3  ;;  %v1349_v45 = vadd.f32 %v4283_v16, %v4391_v13 }
 0xb5c   :  { %v2569_v47 = vmul.f32 -1.442695, %v1830_v49 }
 0xb5d   :  { %v2570_v58 = vmul.f32 -1.442695, %v1831_v31 }
 0xb5e   :  { %3326 = vpow2.f32 %v2569_v47 }
 0xb5f   :  { %3328 = vpow2.f32 %v2570_v58 }
 0xb68   :  { %v3327_v28 = vpop.eup %3326 }
 0xb69   :  { %v1838_v18 = vadd.f32 1.0, %v3327_v28  ;;  %v3329_v30 = vpop.eup %3328 }
 0xb6a   :  { %v1839_v56 = vadd.f32 1.0, %v3329_v30 }
 0xb6b   :  { %3330 = vrcp.f32 %v1838_v18 }
 0xb75   :  { %v3331_v1 = vpop.eup %3330 }
 0xb76   :  { %v1844_v48 = vmul.f32 %v3331_v1, %v1825_v33 }
 0xb78   :  { %v1845_v17 = vadd.f32 %v1844_v48, %v1346_v43 }
 0xb7a   :  { %3332 = vtanh.f32 %v1845_v17 }
 0xb7b   :  { %3334 = vrcp.f32 %v1839_v56 }
 0xb84   :  { %v3333_v63 = vpop.eup %3332 }
 0xb85   :  { %v1847_v57 = vsub.f32 %v4445_v26, %v3333_v63  ;;  %v3335_v62 = vpop.eup %3334 }
 0xb87   :  { %v1848_v9 = vmul.f32 %v3335_v62, %v1847_v57 }
 0xb89   :  { %v4494_v29 = vadd.f32 %v3333_v63, %v1848_v9 }
 0xb8b   :  { %v1850_v15 = vpack.c.bf16 %v4494_v29, %v4494_v29 }
 0xb8d   :  { %1884 = vmatmul.mubr.bf16.vlgmr.msra.gmra.mrb[60].mxu0 %v1850_v15  ;;  %3016 = vmatmul.mubr.bf16.vlgmr.msra.gmra.mrb[52].mxu1 %v1850_v15 }
 0xb8e   :  { %1954 = vmatpush1.bf16.msra.mxu0 %v4116_v32  ;;  %3020 = vmatpush3.bf16.msra.mxu1 %v4194_v7 }
 0xb8f   :  { %1955 = vmatprep.subr.bf16.mxu0 %v4123_v35  ;;  %3021 = vmatprep.subr.bf16.mxu1 %v4821_v14 }
 0xb90   :  { %1985 = vmatprep.mubr.bf16.mxu0 %v4822_v61  ;;  %3035 = vmatprep.mubr.msk.bf16.mxu1 %vm3420_vm0, %v4821_v14 }
 0xb92   :  { %1956 = vmatpush1.bf16.msra.mxu0 %v4128_v60  ;;  %3022 = vmatpush3.bf16.msra.mxu1 %v4211_v11 }
 0xb93   :  { %1957 = vmatprep.subr.bf16.mxu0 %v4135_v19  ;;  %3023 = vmatprep.subr.bf16.mxu1 %v4821_v14 }
 0xb96   :  { %1958 = vmatpush1.bf16.msra.mxu0 %v4140_v20  ;;  %3024 = vmatpush3.bf16.msra.mxu1 %v4222_v37 }
 0xb97   :  { %1959 = vmatprep.subr.bf16.mxu0 %v4147_v21  ;;  %3025 = vmatprep.subr.bf16.mxu1 %v4821_v14 }
 0xb9a   :  { %1960 = vmatpush1.bf16.msra.mxu0 %v4152_v22  ;;  %3026 = vmatpush3.bf16.msra.mxu1 %v4228_v39 }
 0xb9b   :  { %1961 = vmatprep.subr.bf16.mxu0 %v4159_v23  ;;  %3027 = vmatprep.subr.bf16.mxu1 %v4821_v14 }
 0xb9e   :  { %1962 = vmatpush1.bf16.msra.mxu0 %v4164_v24  ;;  %3028 = vmatpush3.bf16.msra.mxu1 %v4235_v40 }
 0xb9f   :  { %1963 = vmatprep.subr.bf16.mxu0 %v4171_v25  ;;  %3029 = vmatprep.subr.bf16.mxu1 %v4821_v14 }
 0xba2   :  { %1964 = vmatpush1.bf16.msra.mxu0 %v4176_v4  ;;  %3030 = vmatpush3.bf16.msra.mxu1 %v4242_v41 }
 0xba3   :  { %1965 = vmatprep.subr.bf16.mxu0 %v4183_v5  ;;  %3031 = vmatprep.subr.bf16.mxu1 %v4821_v14 }
 0xba6   :  { %1966 = vmatpush1.bf16.msra.mxu0 %v4189_v6  ;;  %3032 = vmatpush3.bf16.msra.mxu1 %v4249_v0 }
 0xba7   :  { %1967 = vmatprep.subr.bf16.mxu0 %v4199_v8  ;;  %3033 = vmatprep.subr.bf16.mxu1 %v4821_v14 }
 0xbaa   :  { %1968 = vmatpush1.bf16.msra.mxu0 %v4206_v10  ;;  %3034 = vmatpush3.bf16.msra.mxu1 %v4256_v42 }
 0xbab   :  { %2055 = vmatprep.subr.bf16.mxu0 %v4111_v27  ;;  %3039 = vmatprep.subr.bf16.mxu1 %v4821_v14 }
 0xc60   :  { %v1885_v36 = vpop.f32.mrb[60].mxu0  ;;  %v1926_v26 = vpop.f32.mrb[52].mxu1 }
 0xc61   :  { %v1886_v51 = vadd.f32 %v1885_v36, %v4373_v12  ;;  %v1887_v49 = vpop.f32.mrb[61].mxu0  ;;  %v3017_v38 = vpop.f32.mrb[53].mxu1  ;;  %v1927_v56 = vadd.f32 %v1926_v26, %v4388_v2 }
 0xc62   :  { %v1888_v31 = vadd.f32 %v1887_v49, %v4379_v46  ;;  %v1889_v47 = vpop.f32.mrb[62].mxu0  ;;  %v1929_v58 = vpop.f32.mrb[54].mxu1 }
 0xc63   :  { %v1932_v28 = vadd.f32 %v1886_v51, %v1279_v53  ;;  %v1890_v18 = vpop.f32.mrb[63].mxu0  ;;  %v3018_v30 = vpop.f32.mrb[55].mxu1 }
 0xc64   :  { %v1933_v33 = vadd.f32 %v1888_v31, %v1281_v52  ;;  %v1287_v52 = vadd.f32 %v4300_v54, %v4376_v3  ;;  %v1354_v54 = vadd.f32 %v4353_v59, %v4391_v13  ;;  %v4599_v59 = vld [vmem:[%s4803_s5] ss:$12 sps:$4 sm:$0xff]  }
 0xc65   :  { %v2571_v1 = vmul.f32 -1.442695, %v1932_v28 }
 0xc66   :  { %v2572_v43 = vmul.f32 -1.442695, %v1933_v33 }
 0xc67   :  { %3336 = vpow2.f32 %v2571_v1 }
 0xc68   :  { %3338 = vpow2.f32 %v2572_v43 }
 0xc71   :  { %v3337_v48 = vpop.eup %3336 }
 0xc72   :  { %v1940_v44 = vadd.f32 1.0, %v3337_v48  ;;  %v3339_v17 = vpop.eup %3338 }
 0xc73   :  { %v1941_v9 = vadd.f32 1.0, %v3339_v17 }
 0xc74   :  { %3340 = vrcp.f32 %v1940_v44 }
 0xc7e   :  { %v3341_v63 = vpop.eup %3340 }
 0xc7f   :  { %v1946_v57 = vmul.f32 %v3341_v63, %v1927_v56 }
 0xc81   :  { %v1947_v62 = vadd.f32 %v1946_v57, %v1349_v45 }
 0xc83   :  { %3342 = vtanh.f32 %v1947_v62 }
 0xc84   :  { %3344 = vrcp.f32 %v1941_v9 }
 0xc8d   :  { %v3343_v15 = vpop.eup %3342 }
 0xc8e   :  { %v1949_v36 = vsub.f32 %v4494_v29, %v3343_v15  ;;  %v3345_v53 = vpop.eup %3344 }
 0xc90   :  { %v1950_v51 = vmul.f32 %v3345_v53, %v1949_v36 }
 0xc92   :  { %v4543_v49 = vadd.f32 %v3343_v15, %v1950_v51  ;;  %v4606_v51 = vld [vmem:[%s4803_s5 + $0x1c] ss:$12 sps:$4 sm:$0xff]  }
 0xc94   :  { %v1952_v38 = vpack.c.bf16 %v4543_v49, %v4543_v49 }
 0xc96   :  { %1986 = vmatmul.mubr.bf16.vlgmr.msra.gmra.mrb[64].mxu0 %v1952_v38  ;;  %3036 = vmatmul.mubr.bf16.vlgmr.msra.gmra.mrb[56].mxu1 %v1952_v38 }
 0xc97   :  { %2056 = vmatpush1.bf16.msra.mxu0 %v4116_v32  ;;  %3040 = vmatpush3.bf16.msra.mxu1 %v4194_v7 }
 0xc98   :  { %2057 = vmatprep.subr.bf16.mxu0 %v4123_v35  ;;  %3041 = vmatprep.subr.bf16.mxu1 %v4821_v14 }
 0xc99   :  { %2087 = vmatprep.mubr.bf16.mxu0 %v4822_v61  ;;  %3055 = vmatprep.mubr.msk.bf16.mxu1 %vm3420_vm0, %v4821_v14 }
 0xc9b   :  { %2058 = vmatpush1.bf16.msra.mxu0 %v4128_v60  ;;  %3042 = vmatpush3.bf16.msra.mxu1 %v4211_v11  ;;  %v1285_v60 = vadd.f32 %v4298_v50, %v4370_v34 }
 0xc9c   :  { %2059 = vmatprep.subr.bf16.mxu0 %v4135_v19  ;;  %3043 = vmatprep.subr.bf16.mxu1 %v4821_v14 }
 0xc9f   :  { %2060 = vmatpush1.bf16.msra.mxu0 %v4140_v20  ;;  %3044 = vmatpush3.bf16.msra.mxu1 %v4222_v37 }
 0xca0   :  { %2061 = vmatprep.subr.bf16.mxu0 %v4147_v21  ;;  %3045 = vmatprep.subr.bf16.mxu1 %v4821_v14 }
 0xca3   :  { %2062 = vmatpush1.bf16.msra.mxu0 %v4152_v22  ;;  %3046 = vmatpush3.bf16.msra.mxu1 %v4228_v39 }
 0xca4   :  { %2063 = vmatprep.subr.bf16.mxu0 %v4159_v23  ;;  %3047 = vmatprep.subr.bf16.mxu1 %v4821_v14 }
 0xca7   :  { %2064 = vmatpush1.bf16.msra.mxu0 %v4164_v24  ;;  %3048 = vmatpush3.bf16.msra.mxu1 %v4235_v40 }
 0xca8   :  { %2065 = vmatprep.subr.bf16.mxu0 %v4171_v25  ;;  %3049 = vmatprep.subr.bf16.mxu1 %v4821_v14 }
 0xcab   :  { %2066 = vmatpush1.bf16.msra.mxu0 %v4176_v4  ;;  %3050 = vmatpush3.bf16.msra.mxu1 %v4242_v41 }
 0xcac   :  { %2067 = vmatprep.subr.bf16.mxu0 %v4183_v5  ;;  %3051 = vmatprep.subr.bf16.mxu1 %v4821_v14 }
 0xcaf   :  { %2068 = vmatpush1.bf16.msra.mxu0 %v4189_v6  ;;  %3052 = vmatpush3.bf16.msra.mxu1 %v4249_v0 }
 0xcb0   :  { %2069 = vmatprep.subr.bf16.mxu0 %v4199_v8  ;;  %3053 = vmatprep.subr.bf16.mxu1 %v4821_v14 }
 0xcb3   :  { %2070 = vmatpush1.bf16.msra.mxu0 %v4206_v10  ;;  %3054 = vmatpush3.bf16.msra.mxu1 %v4256_v42 }
 0xcb4   :  { %2157 = vmatprep.subr.bf16.mxu0 %v4111_v27  ;;  %3059 = vmatprep.subr.bf16.mxu1 %v4821_v14 }
 0xd69   :  { %v1987_v32 = vpop.f32.mrb[64].mxu0  ;;  %v2028_v35 = vpop.f32.mrb[56].mxu1 }
 0xd6a   :  { %v1988_v16 = vadd.f32 %v1987_v32, %v4373_v12  ;;  %v1989_v29 = vpop.f32.mrb[65].mxu0  ;;  %v3037_v26 = vpop.f32.mrb[57].mxu1  ;;  %v2029_v44 = vadd.f32 %v2028_v35, %v4388_v2  ;;  %v4824_v35 = vld [vmem:[#allocation9_spill] sm:$0xff] }
 0xd6b   :  { %v1990_v31 = vadd.f32 %v1989_v29, %v4379_v46  ;;  %v1991_v47 = vpop.f32.mrb[66].mxu0  ;;  %v2031_v58 = vpop.f32.mrb[58].mxu1 }
 0xd6c   :  { %v2034_v28 = vadd.f32 %v1988_v16, %v1285_v60  ;;  %v1992_v27 = vpop.f32.mrb[67].mxu0  ;;  %v3038_v18 = vpop.f32.mrb[59].mxu1  ;;  %v1357_v60 = vadd.f32 %v4824_v35, %v4391_v13 }
 0xd6d   :  { %v2035_v30 = vadd.f32 %v1990_v31, %v1287_v52  ;;  %v3398_v18 = vld [vmem:[%s4803_s5 + $0x8] ss:$12 sps:$4 sm:$0xff]  }
 0xd6e   :  { %v2573_v33 = vmul.f32 -1.442695, %v2034_v28 }
 0xd6f   :  { %v2574_v1 = vmul.f32 -1.442695, %v2035_v30  ;;  %v3399_v30 = vld [vmem:[%s4803_s5 + $0x20] ss:$12 sps:$4 sm:$0xff]  }
 0xd70   :  { %3346 = vpow2.f32 %v2573_v33  ;;  %v3400_v33 = vld [vmem:[%s4803_s5 + $0x34] ss:$12 sps:$4 sm:$0xff]  }
 0xd71   :  { %3348 = vpow2.f32 %v2574_v1  ;;  %v3402_v1 = vld [vmem:[%s4803_s5 + $0x38] ss:$12 sps:$4 sm:$0xff]  }
 0xd7a   :  { %v3347_v43 = vpop.eup %3346 }
 0xd7b   :  { %v2042_v50 = vadd.f32 1.0, %v3347_v43  ;;  %v3349_v48 = vpop.eup %3348  ;;  %v3403_v43 = vld [vmem:[%s4803_s5 + $0x4c] ss:$12 sps:$4 sm:$0xff]  }
 0xd7c   :  { %v2043_v45 = vadd.f32 1.0, %v3349_v48  ;;  %v3405_v48 = vld [vmem:[%s4803_s5 + $0x50] ss:$12 sps:$4 sm:$0xff]  }
 0xd7d   :  { %3350 = vrcp.f32 %v2042_v50  ;;  %v3404_v50 = vld [vmem:[%s4803_s5 + $0x48] ss:$12 sps:$4 sm:$0xff]  }
 0xd87   :  { %v3351_v17 = vpop.eup %3350 }
 0xd88   :  { %v2048_v56 = vmul.f32 %v3351_v17, %v2029_v44  ;;  %v3406_v44 = vld [vmem:[%s4803_s5 + $0x64] ss:$12 sps:$4 sm:$0xff]   ;;  %v3407_v17 = vld [vmem:[%s4803_s5 + $0x60] ss:$12 sps:$4 sm:$0xff]  }
 0xd8a   :  { %v2049_v63 = vadd.f32 %v2048_v56, %v1354_v54  ;;  %v3408_v54 = vld [vmem:[%s4803_s5 + $0x68] ss:$12 sps:$4 sm:$0xff]  }
 0xd8b   :  { %v3409_v56 = vld [vmem:[%s4803_s5 + $0x7c] ss:$12 sps:$4 sm:$0xff]  }
 0xd8c   :  { %3352 = vtanh.f32 %v2049_v63  ;;  %v3410_v63 = vld [vmem:[%s4803_s5 + $0x78] ss:$12 sps:$4 sm:$0xff]  }
 0xd8d   :  { %3354 = vrcp.f32 %v2043_v45  ;;  %v3411_v45 = vld [vmem:[%s4803_s5 + $0x80] ss:$12 sps:$4 sm:$0xff]  }
 0xd96   :  { %v3353_v57 = vpop.eup %3352 }
 0xd97   :  { %v2051_v62 = vsub.f32 %v4543_v49, %v3353_v57  ;;  %v3355_v9 = vpop.eup %3354  ;;  %v4616_v49 = vld [vmem:[%s4803_s5 + $0x18] ss:$12 sps:$4 sm:$0xff]  }
 0xd99   :  { %v2052_v15 = vmul.f32 %v3355_v9, %v2051_v62  ;;  %v3413_v62 = vld [vmem:[%s4803_s5 + $0x90] ss:$12 sps:$4 sm:$0xff]   ;;  %v3414_v9 = vld [vmem:[%s4803_s5 + $0x98] ss:$12 sps:$4 sm:$0xff]  }
 0xd9b   :  { %v4592_v36 = vadd.f32 %v3353_v57, %v2052_v15  ;;  %v3412_v57 = vld [vmem:[%s4803_s5 + $0x94] ss:$12 sps:$4 sm:$0xff]   ;;  %v3415_v15 = vld [vmem:[%s4803_s5 + $0xac] ss:$12 sps:$4 sm:$0xff]  }
 0xd9d   :  { %v2054_v53 = vpack.c.bf16 %v4592_v36, %v4592_v36 }
 0xd9f   :  { %2088 = vmatmul.mubr.bf16.vlgmr.msra.gmra.mrb[68].mxu0 %v2054_v53  ;;  %3056 = vmatmul.mubr.bf16.vlgmr.msra.gmra.mrb[60].mxu1 %v2054_v53  ;;  %v3417_v53 = vld [vmem:[%s4803_s5 + $0xb0] ss:$12 sps:$4 sm:$0xff]  }
 0xda0   :  { %2158 = vmatpush1.bf16.msra.mxu0 %v4599_v59  ;;  %3060 = vmatpush3.bf16.msra.mxu1 %v4194_v7 }
 0xda1   :  { %2159 = vmatprep.subr.bf16.mxu0 %v4606_v51  ;;  %3061 = vmatprep.subr.bf16.mxu1 %v4821_v14 }
 0xda2   :  { %2189 = vmatprep.mubr.bf16.mxu0 %v4822_v61  ;;  %3075 = vmatprep.mubr.msk.bf16.mxu1 %vm3420_vm0, %v4821_v14 }
 0xda4   :  { %2160 = vmatpush1.bf16.msra.mxu0 %v4616_v49  ;;  %3062 = vmatpush3.bf16.msra.mxu1 %v4211_v11 }
 0xda5   :  { %2161 = vmatprep.subr.bf16.mxu0 %v4135_v19  ;;  %3063 = vmatprep.subr.bf16.mxu1 %v4821_v14  ;;  %v3397_v19 = vld [vmem:[%s4803_s5 + $0x4] ss:$12 sps:$4 sm:$0xff]  }
 0xda8   :  { %2162 = vmatpush1.bf16.msra.mxu0 %v4140_v20  ;;  %3064 = vmatpush3.bf16.msra.mxu1 %v4222_v37 }
 0xda9   :  { %2163 = vmatprep.subr.bf16.mxu0 %v4147_v21  ;;  %3065 = vmatprep.subr.bf16.mxu1 %v4821_v14 }
 0xdac   :  { %2164 = vmatpush1.bf16.msra.mxu0 %v4152_v22  ;;  %3066 = vmatpush3.bf16.msra.mxu1 %v4228_v39  ;;  %v1289_v22 = vadd.f32 %v4302_v55, %v4370_v34 }
 0xdad   :  { %2165 = vmatprep.subr.bf16.mxu0 %v4159_v23  ;;  %3067 = vmatprep.subr.bf16.mxu1 %v4821_v14 }
 0xdb0   :  { %2166 = vmatpush1.bf16.msra.mxu0 %v4164_v24  ;;  %3068 = vmatpush3.bf16.msra.mxu1 %v4235_v40 }
 0xdb1   :  { %2167 = vmatprep.subr.bf16.mxu0 %v4171_v25  ;;  %3069 = vmatprep.subr.bf16.mxu1 %v4821_v14 }
 0xdb4   :  { %2168 = vmatpush1.bf16.msra.mxu0 %v4176_v4  ;;  %3070 = vmatpush3.bf16.msra.mxu1 %v4242_v41  ;;  %v4823_v4 = vld [vmem:[#allocation2_spill] sm:$0xff] }
 0xdb5   :  { %2169 = vmatprep.subr.bf16.mxu0 %v4183_v5  ;;  %3071 = vmatprep.subr.bf16.mxu1 %v4821_v14  ;;  %v1291_v5 = vadd.f32 %v4823_v4, %v4376_v3 }
 0xdb8   :  { %2170 = vmatpush1.bf16.msra.mxu0 %v4189_v6  ;;  %3072 = vmatpush3.bf16.msra.mxu1 %v4249_v0 }
 0xdb9   :  { %2171 = vmatprep.subr.bf16.mxu0 %v4199_v8  ;;  %3073 = vmatprep.subr.bf16.mxu1 %v4821_v14 }
 0xdbc   :  { %2172 = vmatpush1.bf16.msra.mxu0 %v4206_v10  ;;  %3074 = vmatpush3.bf16.msra.mxu1 %v4256_v42 }
 0xdbd   :  { %2259 = vmatprep.subr.bf16.mxu0 %v3397_v19  ;;  %3079 = vmatprep.subr.bf16.mxu1 %v4821_v14 }
 0xe72   :  { %v2089_v20 = vpop.f32.mrb[68].mxu0  ;;  %v2130_v21 = vpop.f32.mrb[60].mxu1 }
 0xe73   :  { %v2090_v23 = vadd.f32 %v2089_v20, %v4373_v12  ;;  %v2091_v24 = vpop.f32.mrb[69].mxu0  ;;  %v3057_v25 = vpop.f32.mrb[61].mxu1  ;;  %v2131_v38 = vadd.f32 %v2130_v21, %v4388_v2 }
 0xe74   :  { %v2092_v6 = vadd.f32 %v2091_v24, %v4379_v46  ;;  %v2093_v7 = vpop.f32.mrb[70].mxu0  ;;  %v2133_v8 = vpop.f32.mrb[62].mxu1 }
 0xe75   :  { %v2136_v10 = vadd.f32 %v2090_v23, %v1289_v22  ;;  %v2094_v11 = vpop.f32.mrb[71].mxu0  ;;  %v3058_v37 = vpop.f32.mrb[63].mxu1  ;;  %v4826_v23 = vld [vmem:[#allocation5_spill] sm:$0xff] }
 0xe76   :  { %v2137_v39 = vadd.f32 %v2092_v6, %v1291_v5  ;;  %v1297_v24 = vadd.f32 %v4826_v23, %v4376_v3 }
 0xe77   :  { %v2575_v40 = vmul.f32 -1.442695, %v2136_v10 }
 0xe78   :  { %v2576_v41 = vmul.f32 -1.442695, %v2137_v39 }
 0xe79   :  { %3356 = vpow2.f32 %v2575_v40 }
 0xe7a   :  { %3358 = vpow2.f32 %v2576_v41 }
 0xe83   :  { %v3357_v0 = vpop.eup %3356 }
 0xe84   :  { %v2144_v42 = vadd.f32 1.0, %v3357_v0  ;;  %v3359_v55 = vpop.eup %3358 }
 0xe85   :  { %v2145_v26 = vadd.f32 1.0, %v3359_v55  ;;  %v4827_v55 = vld [vmem:[#allocation4_spill] sm:$0xff] }
 0xe86   :  { %3360 = vrcp.f32 %v2144_v42 }
 0xe90   :  { %v3361_v32 = vpop.eup %3360 }
 0xe91   :  { %v2150_v16 = vmul.f32 %v3361_v32, %v2131_v38  ;;  %v1362_v38 = vadd.f32 %v4827_v55, %v4391_v13 }
 0xe93   :  { %v2151_v29 = vadd.f32 %v2150_v16, %v1357_v60 }
 0xe95   :  { %3362 = vtanh.f32 %v2151_v29 }
 0xe96   :  { %3364 = vrcp.f32 %v2145_v26 }
 0xe9f   :  { %v3363_v52 = vpop.eup %3362 }
 0xea0   :  { %v2153_v31 = vsub.f32 %v4592_v36, %v3363_v52  ;;  %v3365_v47 = vpop.eup %3364  ;;  %v3416_v36 = vld [vmem:[%s4803_s5 + $0xa8] ss:$12 sps:$4 sm:$0xff]  }
 0xea2   :  { %v2154_v58 = vmul.f32 %v3365_v47, %v2153_v31 }
 0xea4   :  { %v4658_v28 = vadd.f32 %v3363_v52, %v2154_v58  ;;  %v3218_v58 = vld [vmem:[%s4806_s7] sm:$0xff]  }
 0xea6   :  { %v2156_v27 = vpack.c.bf16 %v4658_v28, %v4658_v28 }
 0xea8   :  { %2190 = vmatmul.mubr.bf16.vlgmr.msra.gmra.mrb[72].mxu0 %v2156_v27  ;;  %3076 = vmatmul.mubr.bf16.vlgmr.msra.gmra.mrb[64].mxu1 %v2156_v27  ;;  %v3220_v27 = vld [vmem:[%s4806_s7 + $0x10] sm:$0xff]  }
 0xea9   :  { %2260 = vmatpush1.bf16.msra.mxu0 %v4599_v59  ;;  %3080 = vmatpush3.bf16.msra.mxu1 %v3398_v18  ;;  %v3221_v18 = vld [vmem:[%s4806_s7 + $0x18] sm:$0xff]  }
 0xeaa   :  { %2261 = vmatprep.subr.bf16.mxu0 %v4606_v51  ;;  %3081 = vmatprep.subr.bf16.mxu1 %v4821_v14 }
 0xeab   :  { %2291 = vmatprep.mubr.bf16.mxu0 %v4822_v61  ;;  %3095 = vmatprep.mubr.msk.bf16.mxu1 %vm3420_vm0, %v4821_v14  ;;  %v3401_v61 = vld [vmem:[%s4803_s5 + $0x30] ss:$12 sps:$4 sm:$0xff]  }
 0xead   :  { %2262 = vmatpush1.bf16.msra.mxu0 %v4616_v49  ;;  %3082 = vmatpush3.bf16.msra.mxu1 %v3399_v30  ;;  %v4825_v49 = vld [vmem:[#allocation3_spill] sm:$0xff]  ;;  %v3222_v30 = vld [vmem:[%s4806_s7 + $0x20] sm:$0xff]  }
 0xeae   :  { %2263 = vmatprep.subr.bf16.mxu0 %v3400_v33  ;;  %3083 = vmatprep.subr.bf16.mxu1 %v4821_v14  ;;  %v1295_v19 = vadd.f32 %v4825_v49, %v4370_v34  ;;  %v3223_v33 = vld [vmem:[%s4806_s7 + $0x28] sm:$0xff]  }
 0xeb1   :  { %2264 = vmatpush1.bf16.msra.mxu0 %v3401_v61  ;;  %3084 = vmatpush3.bf16.msra.mxu1 %v3402_v1  ;;  %v3224_v61 = vld [vmem:[%s4806_s7 + $0x30] sm:$0xff]   ;;  %v3225_v1 = vld [vmem:[%s4806_s7 + $0x38] sm:$0xff]  }
 0xeb2   :  { %2265 = vmatprep.subr.bf16.mxu0 %v3403_v43  ;;  %3085 = vmatprep.subr.bf16.mxu1 %v4821_v14 }
 0xeb5   :  { %2266 = vmatpush1.bf16.msra.mxu0 %v3404_v50  ;;  %3086 = vmatpush3.bf16.msra.mxu1 %v3405_v48  ;;  %v4828_v48 = vld [vmem:[#allocation6_spill] sm:$0xff] }
 0xeb6   :  { %2267 = vmatprep.subr.bf16.mxu0 %v3406_v44  ;;  %3087 = vmatprep.subr.bf16.mxu1 %v4821_v14  ;;  %v1299_v44 = vadd.f32 %v4828_v48, %v4370_v34 }
 0xeb9   :  { %2268 = vmatpush1.bf16.msra.mxu0 %v3407_v17  ;;  %3088 = vmatpush3.bf16.msra.mxu1 %v3408_v54 }
 0xeba   :  { %2269 = vmatprep.subr.bf16.mxu0 %v3409_v56  ;;  %3089 = vmatprep.subr.bf16.mxu1 %v4821_v14 }
 0xebd   :  { %2270 = vmatpush1.bf16.msra.mxu0 %v3410_v63  ;;  %3090 = vmatpush3.bf16.msra.mxu1 %v3411_v45  ;;  %v4829_v63 = vld [vmem:[#allocation8_spill] sm:$0xff] }
 0xebe   :  { %2271 = vmatprep.subr.bf16.mxu0 %v3412_v57  ;;  %3091 = vmatprep.subr.bf16.mxu1 %v4821_v14  ;;  %v1301_v45 = vadd.f32 %v4829_v63, %v4376_v3  ;;  %v4830_v3 = vld [vmem:[#allocation7_spill] sm:$0xff] }
 0xec1   :  { %2272 = vmatpush1.bf16.msra.mxu0 %v3413_v62  ;;  %3092 = vmatpush3.bf16.msra.mxu1 %v3414_v9 }
 0xec2   :  { %2273 = vmatprep.subr.bf16.mxu0 %v3415_v15  ;;  %3093 = vmatprep.subr.bf16.mxu1 %v4821_v14 }
 0xec5   :  { %2274 = vmatpush1.bf16.msra.mxu0 %v3416_v36  ;;  %3094 = vmatpush3.bf16.msra.mxu1 %v3417_v53 }
 0xec6   :  { %3099 = vmatprep.subr.bf16.mxu0 %v4821_v14 }
 0xf7b   :  { %v2191_v59 = vpop.f32.mrb[72].mxu0  ;;  %v2232_v51 = vpop.f32.mrb[64].mxu1 }
 0xf7c   :  { %v2192_v20 = vadd.f32 %v2191_v59, %v4373_v12  ;;  %v2193_v21 = vpop.f32.mrb[73].mxu0  ;;  %v3077_v22 = vpop.f32.mrb[65].mxu1  ;;  %v2233_v0 = vadd.f32 %v2232_v51, %v4388_v2 }
 0xf7d   :  { %v2194_v25 = vadd.f32 %v2193_v21, %v4379_v46  ;;  %v2195_v4 = vpop.f32.mrb[74].mxu0  ;;  %v2235_v5 = vpop.f32.mrb[66].mxu1 }
 0xf7e   :  { %v2238_v6 = vadd.f32 %v2192_v20, %v1295_v19  ;;  %v2196_v7 = vpop.f32.mrb[75].mxu0  ;;  %v3078_v8 = vpop.f32.mrb[67].mxu1 }
 0xf7f   :  { %v2239_v10 = vadd.f32 %v2194_v25, %v1297_v24 }
 0xf80   :  { %v2577_v11 = vmul.f32 -1.442695, %v2238_v6 }
 0xf81   :  { %v2578_v37 = vmul.f32 -1.442695, %v2239_v10 }
 0xf82   :  { %3366 = vpow2.f32 %v2577_v11 }
 0xf83   :  { %3368 = vpow2.f32 %v2578_v37 }
 0xf8c   :  { %v3367_v39 = vpop.eup %3366 }
 0xf8d   :  { %v2246_v40 = vadd.f32 1.0, %v3367_v39  ;;  %v3369_v41 = vpop.eup %3368 }
 0xf8e   :  { %v2247_v60 = vadd.f32 1.0, %v3369_v41 }
 0xf8f   :  { %3370 = vrcp.f32 %v2246_v40 }
 0xf99   :  { %v3371_v42 = vpop.eup %3370 }
 0xf9a   :  { %v2252_v32 = vmul.f32 %v3371_v42, %v2233_v0 }
 0xf9c   :  { %v2253_v35 = vadd.f32 %v2252_v32, %v1362_v38 }
 0xf9e   :  { %3372 = vtanh.f32 %v2253_v35 }
 0xf9f   :  { %3374 = vrcp.f32 %v2247_v60 }
 0xfa8   :  { %v3373_v16 = vpop.eup %3372 }
 0xfa9   :  { %v2255_v29 = vsub.f32 %v4658_v28, %v3373_v16  ;;  %v3375_v26 = vpop.eup %3374  ;;  %v3219_v28 = vld [vmem:[%s4806_s7 + $0x8] sm:$0xff]  }
 0xfab   :  { %v2256_v52 = vmul.f32 %v3375_v26, %v2255_v29 }
 0xfad   :  { %v4746_v31 = vadd.f32 %v3373_v16, %v2256_v52 }
 0xfaf   :  { %v2258_v47 = vpack.c.bf16 %v4746_v31, %v4746_v31 }
 0xfb1   :  { %2292 = vmatmul.mubr.bf16.vlgmr.msra.gmra.mrb[76].mxu0 %v2258_v47  ;;  %3096 = vmatmul.mubr.bf16.vlgmr.msra.gmra.mrb[68].mxu1 %v2258_v47 }
 0xfb2   :  { %3115 = vmatprep.mubr.msk.bf16.mxu0 %vm3420_vm0, %v4821_v14  ;;  %3100 = vmatpush3.bf16.msra.mxu0 %v3218_v58 }
 0xfb3   :  { %3101 = vmatprep.subr.bf16.mxu0 %v4821_v14 }
 0xfb6   :  { %3102 = vmatpush3.bf16.msra.mxu0 %v3219_v28 }
 0xfb7   :  { %3103 = vmatprep.subr.bf16.mxu0 %v4821_v14 }
 0xfba   :  { %3104 = vmatpush3.bf16.msra.mxu0 %v3220_v27 }
 0xfbb   :  { %3105 = vmatprep.subr.bf16.mxu0 %v4821_v14 }
 0xfbe   :  { %3106 = vmatpush3.bf16.msra.mxu0 %v3221_v18 }
 0xfbf   :  { %3107 = vmatprep.subr.bf16.mxu0 %v4821_v14 }
 0xfc2   :  { %3108 = vmatpush3.bf16.msra.mxu0 %v3222_v30 }
 0xfc3   :  { %3109 = vmatprep.subr.bf16.mxu0 %v4821_v14 }
 0xfc6   :  { %3110 = vmatpush3.bf16.msra.mxu0 %v3223_v33 }
 0xfc7   :  { %3111 = vmatprep.subr.bf16.mxu0 %v4821_v14 }
 0xfca   :  { %3112 = vmatpush3.bf16.msra.mxu0 %v3224_v61 }
 0xfcb   :  { %3113 = vmatprep.subr.bf16.mxu0 %v4821_v14 }
 0xfce   :  { %3114 = vmatpush3.bf16.msra.mxu0 %v3225_v1 }
0x1084   :  { %v2293_v43 = vpop.f32.mrb[76].mxu0  ;;  %v2334_v50 = vpop.f32.mrb[68].mxu1 }
0x1085   :  { %v2294_v17 = vadd.f32 %v2293_v43, %v4373_v12  ;;  %v2295_v54 = vpop.f32.mrb[77].mxu0  ;;  %v3097_v56 = vpop.f32.mrb[69].mxu1  ;;  %v2335_v19 = vadd.f32 %v2334_v50, %v4388_v2  ;;  %v2581_v2 = vld [vmem:[%s4807_s8] ss:$0 sm:$0xff] }
0x1086   :  { %v2296_v57 = vadd.f32 %v2295_v54, %v4379_v46  ;;  %v2297_v62 = vpop.f32.mrb[78].mxu0  ;;  %v2337_v9 = vpop.f32.mrb[70].mxu1  ;;  %v1365_v46 = vadd.f32 %v4830_v3, %v4391_v13 }
0x1087   :  { %v2340_v15 = vadd.f32 %v2294_v17, %v1299_v44  ;;  %v2298_v36 = vpop.f32.mrb[79].mxu0  ;;  %v3098_v14 = vpop.f32.mrb[71].mxu1 }
0x1088   :  { %v2341_v53 = vadd.f32 %v2296_v57, %v1301_v45 }
0x1089   :  { %v2579_v59 = vmul.f32 -1.442695, %v2340_v15 }
0x108a   :  { %v2580_v51 = vmul.f32 -1.442695, %v2341_v53 }
0x108b   :  { %3376 = vpow2.f32 %v2579_v59 }
0x108c   :  { %3378 = vpow2.f32 %v2580_v51 }
0x1095   :  { %v3377_v49 = vpop.eup %3376 }
0x1096   :  { %v2348_v34 = vadd.f32 1.0, %v3377_v49  ;;  %v3379_v12 = vpop.eup %3378 }
0x1097   :  { %v2349_v23 = vadd.f32 1.0, %v3379_v12 }
0x1098   :  { %3380 = vrcp.f32 %v2348_v34 }
0x10a2   :  { %v3381_v20 = vpop.eup %3380 }
0x10a3   :  { %v2354_v21 = vmul.f32 %v3381_v20, %v2335_v19 }
0x10a5   :  { %v2355_v22 = vadd.f32 %v2354_v21, %v1365_v46 }
0x10a7   :  { %3382 = vtanh.f32 %v2355_v22 }
0x10a8   :  { %3384 = vrcp.f32 %v2349_v23 }
0x10b1   :  { %v3383_v24 = vpop.eup %3382 }
0x10b2   :  { %v2357_v25 = vsub.f32 %v4746_v31, %v3383_v24  ;;  %v3385_v4 = vpop.eup %3384 }
0x10b4   :  { %v2358_v5 = vmul.f32 %v3385_v4, %v2357_v25 }
0x10b6   :  { %v2359_v6 = vadd.f32 %v3383_v24, %v2358_v5 }
0x10b8   :  { %v2376_v7 = vpack.c.bf16 %v2359_v6, %v2359_v6 }
0x10ba   :  { %3116 = vmatmul.mubr.bf16.vlgmr.msra.gmra.mrb[80].mxu0 %v2376_v7 }
0x118d   :  { %v2466_v8 = vpop.f32.mrb[80].mxu0 }
0x118e   :  { %v2467_v10 = vadd.f32 %v2581_v2, %v2466_v8  ;;  %v3117_v13 = vpop.f32.mrb[81].mxu0 }
0x118f   :  { %v2469_v11 = vpop.f32.mrb[82].mxu0 }
0x1190   :  { %2472 = vst [vmem:[%s4808_s9] sm:$0xff] %v2467_v10  ;;  %v3118_v37 = vpop.f32.mrb[83].mxu0 }

</bundles_post_ra>
